<compile_context>
chip_gen: v5e
topology: v5e:2x2
jax: 0.10.0
libtpu: 0.0.40
codegen_flags: <defaults>
</compile_context>

<pallas_src>
import jax
import jax.numpy as jnp
from jax.experimental import pallas as pl
from jax.experimental.pallas import tpu as pltpu


# ----------------------------------------------------------------------------
# Kernel: one node type per grid step, 2-layer LSTM, writes last-step hidden.
# ----------------------------------------------------------------------------
def _fused_lstm_kernel(x_ref, wih0_ref, whh0_ref, b0_ref, w1_ref, b1_ref,
                       y_ref):
    # x_ref    : [T*B, D]   bf16   (time-major rows, layer-0 input)
    # wih0_ref : [D, 4H]    bf16   gate cols ordered (i, f, o, g)
    # whh0_ref : [H, 4H]    bf16
    # b0_ref   : [1, 4H]    f32    (bias_ih_l0 + bias_hh_l0)
    # w1_ref   : [2H, 4H]   bf16   ([W_ih_l1 ; W_hh_l1] stacked)
    # b1_ref   : [1, 4H]    f32
    # y_ref    : [B, H]     f32
    B, H = y_ref.shape
    TB = x_ref.shape[0]
    T = TB // B

    # Layer-0 input projection for all timesteps at once (single MXU call);
    # b0 folded in here so its broadcast happens exactly once.
    gx0 = jnp.dot(x_ref[...], wih0_ref[...],
                  preferred_element_type=jnp.float32) + b0_ref[...]  # [T*B,4H]

    whh0 = whh0_ref[...]                                  # [H, 4H]  bf16
    w1 = w1_ref[...]                                      # [2H, 4H] bf16
    b1 = jnp.broadcast_to(b1_ref[...], (B, 4 * H))        # hoisted broadcast

    def gates_to_hc(gates, c):
        # gate columns are (i, f, o, g): one contiguous sigmoid, one tanh.
        sig = jax.nn.sigmoid(gates[:, :3 * H])
        g = jnp.tanh(gates[:, 3 * H:])
        i = sig[:, :H]
        f = sig[:, H:2 * H]
        o = sig[:, 2 * H:3 * H]
        c_new = f * c + i * g
        h_new = o * jnp.tanh(c_new)
        return h_new, c_new

    zeros = jnp.zeros((B, H), jnp.float32)   # PyTorch default zero init state
    h0, c0, h1, c1 = zeros, zeros, zeros, zeros

    for t in range(T):  # fully unrolled: T is small and static
        # layer 0: only the recurrent matmul remains on the serial path
        g0 = gx0[t * B:(t + 1) * B, :] + jnp.dot(
            h0.astype(whh0.dtype), whh0, preferred_element_type=jnp.float32)
        h0, c0 = gates_to_hc(g0, c0)
        # layer 1: fused input+recurrent matmul on [h0 (new), h1 (prev)]
        hcat = jnp.concatenate([h0, h1], axis=1).astype(w1.dtype)   # [B, 2H]
        g1 = jnp.dot(hcat, w1, preferred_element_type=jnp.float32) + b1
        h1, c1 = gates_to_hc(g1, c1)

    y_ref[...] = h1.astype(y_ref.dtype)


def _type_block(*inner_shape):
    """BlockSpec selecting one node type (leading axis squeezed) per grid step."""
    nd = len(inner_shape)
    return pl.BlockSpec((None,) + tuple(inner_shape),
                        lambda n, _nd=nd: (n,) + (0,) * _nd)


def run_fused_lstm(x_stack, wih0_s, whh0_s, b0_s, w1_s, b1_s, batch, hidden):
    """Single pallas_call over all node types: grid=(num_node_types,)."""
    nt, tb, d = x_stack.shape
    H = hidden
    return pl.pallas_call(
        _fused_lstm_kernel,
        out_shape=jax.ShapeDtypeStruct((nt, batch, H), jnp.float32),
        grid=(nt,),
        in_specs=[
            _type_block(tb, d),
            _type_block(d, 4 * H),
            _type_block(H, 4 * H),
            _type_block(1, 4 * H),
            _type_block(2 * H, 4 * H),
            _type_block(1, 4 * H),
        ],
        out_specs=_type_block(batch, H),
        compiler_params=pltpu.CompilerParams(
            dimension_semantics=("parallel",)),
    )(x_stack, wih0_s, whh0_s, b0_s, w1_s, b1_s)


# ----------------------------------------------------------------------------
# Parameters (PyTorch layout) and packing into the kernel layout.
# ----------------------------------------------------------------------------
def make_lstm_params(key, input_size, hidden_size):
    """Deterministic synthetic nn.LSTM(num_layers=2) params (PyTorch layout)."""
    ks = jax.random.split(key, 8)
    bound = 1.0 / (hidden_size ** 0.5)

    def u(k, shape):
        return jax.random.uniform(k, shape, jnp.float32, -bound, bound)

    return (u(ks[0], (4 * hidden_size, input_size)),    # weight_ih_l0
            u(ks[1], (4 * hidden_size, hidden_size)),   # weight_hh_l0
            u(ks[2], (4 * hidden_size,)),               # bias_ih_l0
            u(ks[3], (4 * hidden_size,)),               # bias_hh_l0
            u(ks[4], (4 * hidden_size, hidden_size)),   # weight_ih_l1
            u(ks[5], (4 * hidden_size, hidden_size)),   # weight_hh_l1
            u(ks[6], (4 * hidden_size,)),               # bias_ih_l1
            u(ks[7], (4 * hidden_size,)))               # bias_hh_l1


def _reorder_cols(w_t, H):
    """[in, 4H] columns from PyTorch order (i,f,g,o) -> kernel order (i,f,o,g)."""
    return jnp.concatenate(
        [w_t[:, :2 * H], w_t[:, 3 * H:], w_t[:, 2 * H:3 * H]], axis=1)


def pack_params(params, hidden_size, d_pad):
    """PyTorch layout -> kernel layout: transposed, gate-permuted, fused, bf16."""
    (w_ih0, w_hh0, b_ih0, b_hh0, w_ih1, w_hh1, b_ih1, b_hh1) = params
    H = hidden_size
    wih0 = _reorder_cols(w_ih0.T, H)                                   # [D,4H]
    wih0 = jnp.pad(wih0, ((0, d_pad - wih0.shape[0]), (0, 0)))
    whh0 = _reorder_cols(w_hh0.T, H)                                   # [H,4H]
    b0 = _reorder_cols((b_ih0 + b_hh0)[None, :], H)                    # [1,4H]
    w1 = jnp.concatenate(
        [_reorder_cols(w_ih1.T, H), _reorder_cols(w_hh1.T, H)], axis=0)  # [2H,4H]
    b1 = _reorder_cols((b_ih1 + b_hh1)[None, :], H)
    return (wih0.astype(jnp.bfloat16), whh0.astype(jnp.bfloat16),
            b0.astype(jnp.float32), w1.astype(jnp.bfloat16),
            b1.astype(jnp.float32))


# ----------------------------------------------------------------------------
# Forward pass (matches the PyTorch module's data rearrangement).
# ----------------------------------------------------------------------------
def prepare_dx(x, seq_len, dim):
    """Strided-slice / flip / stack preprocessing of the PyTorch forward()."""
    B, F = x.shape
    tail = x[:, F - seq_len * dim:]          # last seq_len*dim columns
    dx = tail.reshape(B, seq_len, dim)       # [B, T, D]
    return jnp.flip(dx, axis=1)              # torch.flip(dx_i, [1])


def lstm_forward(x_dict, params_dict, dim_dict, seq_len, hidden_size):
    """Fused forward over all node types: one pallas_call, one grid axis."""
    node_types = list(dim_dict.keys())
    d_pad = max(dim_dict.values())
    H = hidden_size

    xs, wih0s, whh0s, b0s, w1s, b1s = [], [], [], [], [], []
    batch = None
    for nt in node_types:
        dim = dim_dict[nt]
        dx = prepare_dx(x_dict[nt], seq_len, dim)           # [B, T, dim]
        batch, T, _ = dx.shape
        x_tbd = jnp.transpose(dx, (1, 0, 2))                # [T, B, dim]
        x_tbd = jnp.pad(x_tbd, ((0, 0), (0, 0), (0, d_pad - dim)))
        xs.append(x_tbd.reshape(T * batch, d_pad).astype(jnp.bfloat16))
        wih0, whh0, b0, w1, b1 = pack_params(params_dict[nt], H, d_pad)
        wih0s.append(wih0)
        whh0s.append(whh0)
        b0s.append(b0)
        w1s.append(w1)
        b1s.append(b1)

    y = run_fused_lstm(jnp.stack(xs), jnp.stack(wih0s), jnp.stack(whh0s),
                       jnp.stack(b0s), jnp.stack(w1s), jnp.stack(b1s),
                       batch, H)
    return {nt: y[n] for n, nt in enumerate(node_types)}


# ----------------------------------------------------------------------------
# Pure-JAX reference (2-layer PyTorch LSTM, last-step hidden of layer 1).
# ----------------------------------------------------------------------------
def _lstm_ref(dx, params, H, matmul_dtype=jnp.float32):
    (w_ih0, w_hh0, b_ih0, b_hh0, w_ih1, w_hh1, b_ih1, b_hh1) = params
    B = dx.shape[0]

    def mm(a, w):   # a @ w.T, operands in matmul_dtype, f32 accumulation
        return jnp.dot(a.astype(matmul_dtype), w.T.astype(matmul_dtype),
                       preferred_element_type=jnp.float32)

    def cell(x_t, h, c, w_ih, w_hh, b_ih, b_hh):
        g = mm(x_t, w_ih) + mm(h, w_hh) + b_ih + b_hh
        i = jax.nn.sigmoid(g[:, :H])
        f = jax.nn.sigmoid(g[:, H:2 * H])
        gg = jnp.tanh(g[:, 2 * H:3 * H])
        o = jax.nn.sigmoid(g[:, 3 * H:])
        c = f * c + i * gg
        return o * jnp.tanh(c), c

    h0 = c0 = h1 = c1 = jnp.zeros((B, H), jnp.float32)
    for t in range(dx.shape[1]):
        h0, c0 = cell(dx[:, t], h0, c0, w_ih0, w_hh0, b_ih0, b_hh0)
        h1, c1 = cell(h0, h1, c1, w_ih1, w_hh1, b_ih1, b_hh1)
    return h1


if __name__ == "__main__":
    key = jax.random.PRNGKey(0)

    # Module config (small, consistent with the forward-pass semantics)
    out_channels = 32          # hidden size H
    seq_len = 8
    dim_dict = {"paper": 4, "author": 3}
    batch = 2

    # Deterministic inputs: x_dict[node] has shape [B, F] with F >= seq_len*dim
    # (extra leading columns are ignored by the strided slicing).
    x_dict = {}
    params_dict = {}
    for node_type, dim in dim_dict.items():
        key, kx, kp = jax.random.split(key, 3)
        F = seq_len * dim + 5
        x_dict[node_type] = jax.random.normal(kx, (batch, F), jnp.float32)
        params_dict[node_type] = make_lstm_params(kp, dim, out_channels)

    y_dict = lstm_forward(x_dict, params_dict, dim_dict, seq_len, out_channels)
    y_dict = jax.tree_util.tree_map(jax.block_until_ready, y_dict)

    # Correctness checks.
    for node_type, dim in dim_dict.items():
        dx = prepare_dx(x_dict[node_type], seq_len, dim)
        y = y_dict[node_type]
        assert y.shape == (batch, out_channels)
        # Matched-precision reference (bf16 MXU operands, f32 accumulate).
        y_ref_m = _lstm_ref(dx, params_dict[node_type], out_channels,
                            matmul_dtype=jnp.bfloat16)
        assert jnp.allclose(y, y_ref_m, rtol=1e-3, atol=1e-3), node_type
        # Pure-f32 semantic reference (loose tolerance covers bf16 operands).
        y_ref_f = _lstm_ref(dx, params_dict[node_type], out_channels)
        assert jnp.allclose(y, y_ref_f, rtol=5e-2, atol=5e-2), node_type

    print("KERNEL_OK")
</pallas_src>

<mosaic_0001>
module attributes {stable_mosaic.version = 11 : i64} {
  func.func @_fused_lstm_kernel(%arg0: i32, %arg1: memref<1x16x4xbf16, #tpu.memory_space<vmem>>, %arg2: memref<1x4x128xbf16, #tpu.memory_space<vmem>>, %arg3: memref<1x32x128xbf16, #tpu.memory_space<vmem>>, %arg4: memref<1x1x128xf32, #tpu.memory_space<vmem>>, %arg5: memref<1x64x128xbf16, #tpu.memory_space<vmem>>, %arg6: memref<1x1x128xf32, #tpu.memory_space<vmem>>, %arg7: memref<1x2x32xf32, #tpu.memory_space<vmem>>) attributes {dimension_semantics = [#tpu.dimension_semantics<parallel>], iteration_bounds = array<i64: 2>, scalar_prefetch = 0 : i64, scratch_operands = 0 : i64, tpu.core_type = #tpu.core_type<tc>, window_params = [{transform_indices = @transform_0, window_bounds = array<i64: 1, 16, 4>}, {transform_indices = @transform_1, window_bounds = array<i64: 1, 4, 128>}, {transform_indices = @transform_2, window_bounds = array<i64: 1, 32, 128>}, {transform_indices = @transform_3, window_bounds = array<i64: 1, 1, 128>}, {transform_indices = @transform_4, window_bounds = array<i64: 1, 64, 128>}, {transform_indices = @transform_5, window_bounds = array<i64: 1, 1, 128>}, {transform_indices = @transform_6, window_bounds = array<i64: 1, 2, 32>}]} {
    %c0 = arith.constant 0 : index
    %c0_0 = arith.constant 0 : index
    %c0_1 = arith.constant 0 : index
    %0 = vector.load %arg1[%c0, %c0_0, %c0_1] : memref<1x16x4xbf16, #tpu.memory_space<vmem>>, vector<1x16x4xbf16>
    %1 = vector.shape_cast %0 : vector<1x16x4xbf16> to vector<16x4xbf16>
    %c0_2 = arith.constant 0 : index
    %c0_3 = arith.constant 0 : index
    %c0_4 = arith.constant 0 : index
    %2 = vector.load %arg2[%c0_2, %c0_3, %c0_4] : memref<1x4x128xbf16, #tpu.memory_space<vmem>>, vector<1x4x128xbf16>
    %3 = vector.shape_cast %2 : vector<1x4x128xbf16> to vector<4x128xbf16>
    %cst = arith.constant dense<0.000000e+00> : vector<16x128xf32>
    %4 = tpu.matmul %1, %3, %cst {dimension_numbers = #tpu.dot_dimension_numbers<[1], [0], [0], [1], [0, 0, 1, 1], [], []>} : vector<16x4xbf16>, vector<4x128xbf16>, vector<16x128xf32> -> vector<16x128xf32>
    %c0_5 = arith.constant 0 : index
    %c0_6 = arith.constant 0 : index
    %c0_7 = arith.constant 0 : index
    %5 = vector.load %arg4[%c0_5, %c0_6, %c0_7] : memref<1x1x128xf32, #tpu.memory_space<vmem>>, vector<1x1x128xf32>
    %6 = vector.shape_cast %5 : vector<1x1x128xf32> to vector<1x128xf32>
    %7 = vector.broadcast %6 : vector<1x128xf32> to vector<16x128xf32>
    %8 = arith.addf %4, %7 : vector<16x128xf32>
    %c0_8 = arith.constant 0 : index
    %c0_9 = arith.constant 0 : index
    %c0_10 = arith.constant 0 : index
    %9 = vector.load %arg3[%c0_8, %c0_9, %c0_10] : memref<1x32x128xbf16, #tpu.memory_space<vmem>>, vector<1x32x128xbf16>
    %10 = vector.shape_cast %9 : vector<1x32x128xbf16> to vector<32x128xbf16>
    %c0_11 = arith.constant 0 : index
    %c0_12 = arith.constant 0 : index
    %c0_13 = arith.constant 0 : index
    %11 = vector.load %arg5[%c0_11, %c0_12, %c0_13] : memref<1x64x128xbf16, #tpu.memory_space<vmem>>, vector<1x64x128xbf16>
    %12 = vector.shape_cast %11 : vector<1x64x128xbf16> to vector<64x128xbf16>
    %c0_14 = arith.constant 0 : index
    %c0_15 = arith.constant 0 : index
    %c0_16 = arith.constant 0 : index
    %13 = vector.load %arg6[%c0_14, %c0_15, %c0_16] : memref<1x1x128xf32, #tpu.memory_space<vmem>>, vector<1x1x128xf32>
    %14 = vector.shape_cast %13 : vector<1x1x128xf32> to vector<1x128xf32>
    %15 = vector.shape_cast %14 : vector<1x128xf32> to vector<1x128xf32>
    %16 = vector.broadcast %15 : vector<1x128xf32> to vector<2x128xf32>
    %cst_17 = arith.constant 0.000000e+00 : f32
    %17 = vector.broadcast %cst_17 : f32 to vector<2x32xf32>
    %18 = vector.extract_strided_slice %8 {offsets = [0, 0], sizes = [2, 128], strides = [1, 1]} : vector<16x128xf32> to vector<2x128xf32>
    %19 = arith.truncf %17 : vector<2x32xf32> to vector<2x32xbf16>
    %cst_18 = arith.constant dense<0.000000e+00> : vector<2x128xf32>
    %20 = tpu.matmul %19, %10, %cst_18 {dimension_numbers = #tpu.dot_dimension_numbers<[1], [0], [0], [1], [0, 0, 1, 1], [], []>} : vector<2x32xbf16>, vector<32x128xbf16>, vector<2x128xf32> -> vector<2x128xf32>
    %21 = arith.addf %18, %20 : vector<2x128xf32>
    %22 = vector.extract_strided_slice %21 {offsets = [0, 0], sizes = [2, 96], strides = [1, 1]} : vector<2x128xf32> to vector<2x96xf32>
    %23 = arith.negf %22 : vector<2x96xf32>
    %24 = math.exp %23 : vector<2x96xf32>
    %cst_19 = arith.constant 1.000000e+00 : f32
    %25 = vector.broadcast %cst_19 : f32 to vector<2x96xf32>
    %26 = arith.addf %25, %24 : vector<2x96xf32>
    %27 = arith.divf %25, %26 : vector<2x96xf32>
    %28 = vector.extract_strided_slice %21 {offsets = [0, 96], sizes = [2, 32], strides = [1, 1]} : vector<2x128xf32> to vector<2x32xf32>
    %29 = math.tanh %28 : vector<2x32xf32>
    %30 = vector.extract_strided_slice %27 {offsets = [0, 0], sizes = [2, 32], strides = [1, 1]} : vector<2x96xf32> to vector<2x32xf32>
    %31 = vector.extract_strided_slice %27 {offsets = [0, 32], sizes = [2, 32], strides = [1, 1]} : vector<2x96xf32> to vector<2x32xf32>
    %32 = vector.extract_strided_slice %27 {offsets = [0, 64], sizes = [2, 32], strides = [1, 1]} : vector<2x96xf32> to vector<2x32xf32>
    %33 = arith.mulf %31, %17 : vector<2x32xf32>
    %34 = arith.mulf %30, %29 : vector<2x32xf32>
    %35 = arith.addf %33, %34 : vector<2x32xf32>
    %36 = math.tanh %35 : vector<2x32xf32>
    %37 = arith.mulf %32, %36 : vector<2x32xf32>
    %38 = tpu.concatenate %37, %17 in 1 : vector<2x32xf32>, vector<2x32xf32> -> vector<2x64xf32>
    %39 = arith.truncf %38 : vector<2x64xf32> to vector<2x64xbf16>
    %cst_20 = arith.constant dense<0.000000e+00> : vector<2x128xf32>
    %40 = tpu.matmul %39, %12, %cst_20 {dimension_numbers = #tpu.dot_dimension_numbers<[1], [0], [0], [1], [0, 0, 1, 1], [], []>} : vector<2x64xbf16>, vector<64x128xbf16>, vector<2x128xf32> -> vector<2x128xf32>
    %41 = arith.addf %40, %16 : vector<2x128xf32>
    %42 = vector.extract_strided_slice %41 {offsets = [0, 0], sizes = [2, 96], strides = [1, 1]} : vector<2x128xf32> to vector<2x96xf32>
    %43 = arith.negf %42 : vector<2x96xf32>
    %44 = math.exp %43 : vector<2x96xf32>
    %cst_21 = arith.constant 1.000000e+00 : f32
    %45 = vector.broadcast %cst_21 : f32 to vector<2x96xf32>
    %46 = arith.addf %45, %44 : vector<2x96xf32>
    %47 = arith.divf %45, %46 : vector<2x96xf32>
    %48 = vector.extract_strided_slice %41 {offsets = [0, 96], sizes = [2, 32], strides = [1, 1]} : vector<2x128xf32> to vector<2x32xf32>
    %49 = math.tanh %48 : vector<2x32xf32>
    %50 = vector.extract_strided_slice %47 {offsets = [0, 0], sizes = [2, 32], strides = [1, 1]} : vector<2x96xf32> to vector<2x32xf32>
    %51 = vector.extract_strided_slice %47 {offsets = [0, 32], sizes = [2, 32], strides = [1, 1]} : vector<2x96xf32> to vector<2x32xf32>
    %52 = vector.extract_strided_slice %47 {offsets = [0, 64], sizes = [2, 32], strides = [1, 1]} : vector<2x96xf32> to vector<2x32xf32>
    %53 = arith.mulf %51, %17 : vector<2x32xf32>
    %54 = arith.mulf %50, %49 : vector<2x32xf32>
    %55 = arith.addf %53, %54 : vector<2x32xf32>
    %56 = math.tanh %55 : vector<2x32xf32>
    %57 = arith.mulf %52, %56 : vector<2x32xf32>
    %58 = vector.extract_strided_slice %8 {offsets = [2, 0], sizes = [2, 128], strides = [1, 1]} : vector<16x128xf32> to vector<2x128xf32>
    %59 = arith.truncf %37 : vector<2x32xf32> to vector<2x32xbf16>
    %cst_22 = arith.constant dense<0.000000e+00> : vector<2x128xf32>
    %60 = tpu.matmul %59, %10, %cst_22 {dimension_numbers = #tpu.dot_dimension_numbers<[1], [0], [0], [1], [0, 0, 1, 1], [], []>} : vector<2x32xbf16>, vector<32x128xbf16>, vector<2x128xf32> -> vector<2x128xf32>
    %61 = arith.addf %58, %60 : vector<2x128xf32>
    %62 = vector.extract_strided_slice %61 {offsets = [0, 0], sizes = [2, 96], strides = [1, 1]} : vector<2x128xf32> to vector<2x96xf32>
    %63 = arith.negf %62 : vector<2x96xf32>
    %64 = math.exp %63 : vector<2x96xf32>
    %cst_23 = arith.constant 1.000000e+00 : f32
    %65 = vector.broadcast %cst_23 : f32 to vector<2x96xf32>
    %66 = arith.addf %65, %64 : vector<2x96xf32>
    %67 = arith.divf %65, %66 : vector<2x96xf32>
    %68 = vector.extract_strided_slice %61 {offsets = [0, 96], sizes = [2, 32], strides = [1, 1]} : vector<2x128xf32> to vector<2x32xf32>
    %69 = math.tanh %68 : vector<2x32xf32>
    %70 = vector.extract_strided_slice %67 {offsets = [0, 0], sizes = [2, 32], strides = [1, 1]} : vector<2x96xf32> to vector<2x32xf32>
    %71 = vector.extract_strided_slice %67 {offsets = [0, 32], sizes = [2, 32], strides = [1, 1]} : vector<2x96xf32> to vector<2x32xf32>
    %72 = vector.extract_strided_slice %67 {offsets = [0, 64], sizes = [2, 32], strides = [1, 1]} : vector<2x96xf32> to vector<2x32xf32>
    %73 = arith.mulf %71, %35 : vector<2x32xf32>
    %74 = arith.mulf %70, %69 : vector<2x32xf32>
    %75 = arith.addf %73, %74 : vector<2x32xf32>
    %76 = math.tanh %75 : vector<2x32xf32>
    %77 = arith.mulf %72, %76 : vector<2x32xf32>
    %78 = tpu.concatenate %77, %57 in 1 : vector<2x32xf32>, vector<2x32xf32> -> vector<2x64xf32>
    %79 = arith.truncf %78 : vector<2x64xf32> to vector<2x64xbf16>
    %cst_24 = arith.constant dense<0.000000e+00> : vector<2x128xf32>
    %80 = tpu.matmul %79, %12, %cst_24 {dimension_numbers = #tpu.dot_dimension_numbers<[1], [0], [0], [1], [0, 0, 1, 1], [], []>} : vector<2x64xbf16>, vector<64x128xbf16>, vector<2x128xf32> -> vector<2x128xf32>
    %81 = arith.addf %80, %16 : vector<2x128xf32>
    %82 = vector.extract_strided_slice %81 {offsets = [0, 0], sizes = [2, 96], strides = [1, 1]} : vector<2x128xf32> to vector<2x96xf32>
    %83 = arith.negf %82 : vector<2x96xf32>
    %84 = math.exp %83 : vector<2x96xf32>
    %cst_25 = arith.constant 1.000000e+00 : f32
    %85 = vector.broadcast %cst_25 : f32 to vector<2x96xf32>
    %86 = arith.addf %85, %84 : vector<2x96xf32>
    %87 = arith.divf %85, %86 : vector<2x96xf32>
    %88 = vector.extract_strided_slice %81 {offsets = [0, 96], sizes = [2, 32], strides = [1, 1]} : vector<2x128xf32> to vector<2x32xf32>
    %89 = math.tanh %88 : vector<2x32xf32>
    %90 = vector.extract_strided_slice %87 {offsets = [0, 0], sizes = [2, 32], strides = [1, 1]} : vector<2x96xf32> to vector<2x32xf32>
    %91 = vector.extract_strided_slice %87 {offsets = [0, 32], sizes = [2, 32], strides = [1, 1]} : vector<2x96xf32> to vector<2x32xf32>
    %92 = vector.extract_strided_slice %87 {offsets = [0, 64], sizes = [2, 32], strides = [1, 1]} : vector<2x96xf32> to vector<2x32xf32>
    %93 = arith.mulf %91, %55 : vector<2x32xf32>
    %94 = arith.mulf %90, %89 : vector<2x32xf32>
    %95 = arith.addf %93, %94 : vector<2x32xf32>
    %96 = math.tanh %95 : vector<2x32xf32>
    %97 = arith.mulf %92, %96 : vector<2x32xf32>
    %98 = vector.extract_strided_slice %8 {offsets = [4, 0], sizes = [2, 128], strides = [1, 1]} : vector<16x128xf32> to vector<2x128xf32>
    %99 = arith.truncf %77 : vector<2x32xf32> to vector<2x32xbf16>
    %cst_26 = arith.constant dense<0.000000e+00> : vector<2x128xf32>
    %100 = tpu.matmul %99, %10, %cst_26 {dimension_numbers = #tpu.dot_dimension_numbers<[1], [0], [0], [1], [0, 0, 1, 1], [], []>} : vector<2x32xbf16>, vector<32x128xbf16>, vector<2x128xf32> -> vector<2x128xf32>
    %101 = arith.addf %98, %100 : vector<2x128xf32>
    %102 = vector.extract_strided_slice %101 {offsets = [0, 0], sizes = [2, 96], strides = [1, 1]} : vector<2x128xf32> to vector<2x96xf32>
    %103 = arith.negf %102 : vector<2x96xf32>
    %104 = math.exp %103 : vector<2x96xf32>
    %cst_27 = arith.constant 1.000000e+00 : f32
    %105 = vector.broadcast %cst_27 : f32 to vector<2x96xf32>
    %106 = arith.addf %105, %104 : vector<2x96xf32>
    %107 = arith.divf %105, %106 : vector<2x96xf32>
    %108 = vector.extract_strided_slice %101 {offsets = [0, 96], sizes = [2, 32], strides = [1, 1]} : vector<2x128xf32> to vector<2x32xf32>
    %109 = math.tanh %108 : vector<2x32xf32>
    %110 = vector.extract_strided_slice %107 {offsets = [0, 0], sizes = [2, 32], strides = [1, 1]} : vector<2x96xf32> to vector<2x32xf32>
    %111 = vector.extract_strided_slice %107 {offsets = [0, 32], sizes = [2, 32], strides = [1, 1]} : vector<2x96xf32> to vector<2x32xf32>
    %112 = vector.extract_strided_slice %107 {offsets = [0, 64], sizes = [2, 32], strides = [1, 1]} : vector<2x96xf32> to vector<2x32xf32>
    %113 = arith.mulf %111, %75 : vector<2x32xf32>
    %114 = arith.mulf %110, %109 : vector<2x32xf32>
    %115 = arith.addf %113, %114 : vector<2x32xf32>
    %116 = math.tanh %115 : vector<2x32xf32>
    %117 = arith.mulf %112, %116 : vector<2x32xf32>
    %118 = tpu.concatenate %117, %97 in 1 : vector<2x32xf32>, vector<2x32xf32> -> vector<2x64xf32>
    %119 = arith.truncf %118 : vector<2x64xf32> to vector<2x64xbf16>
    %cst_28 = arith.constant dense<0.000000e+00> : vector<2x128xf32>
    %120 = tpu.matmul %119, %12, %cst_28 {dimension_numbers = #tpu.dot_dimension_numbers<[1], [0], [0], [1], [0, 0, 1, 1], [], []>} : vector<2x64xbf16>, vector<64x128xbf16>, vector<2x128xf32> -> vector<2x128xf32>
    %121 = arith.addf %120, %16 : vector<2x128xf32>
    %122 = vector.extract_strided_slice %121 {offsets = [0, 0], sizes = [2, 96], strides = [1, 1]} : vector<2x128xf32> to vector<2x96xf32>
    %123 = arith.negf %122 : vector<2x96xf32>
    %124 = math.exp %123 : vector<2x96xf32>
    %cst_29 = arith.constant 1.000000e+00 : f32
    %125 = vector.broadcast %cst_29 : f32 to vector<2x96xf32>
    %126 = arith.addf %125, %124 : vector<2x96xf32>
    %127 = arith.divf %125, %126 : vector<2x96xf32>
    %128 = vector.extract_strided_slice %121 {offsets = [0, 96], sizes = [2, 32], strides = [1, 1]} : vector<2x128xf32> to vector<2x32xf32>
    %129 = math.tanh %128 : vector<2x32xf32>
    %130 = vector.extract_strided_slice %127 {offsets = [0, 0], sizes = [2, 32], strides = [1, 1]} : vector<2x96xf32> to vector<2x32xf32>
    %131 = vector.extract_strided_slice %127 {offsets = [0, 32], sizes = [2, 32], strides = [1, 1]} : vector<2x96xf32> to vector<2x32xf32>
    %132 = vector.extract_strided_slice %127 {offsets = [0, 64], sizes = [2, 32], strides = [1, 1]} : vector<2x96xf32> to vector<2x32xf32>
    %133 = arith.mulf %131, %95 : vector<2x32xf32>
    %134 = arith.mulf %130, %129 : vector<2x32xf32>
    %135 = arith.addf %133, %134 : vector<2x32xf32>
    %136 = math.tanh %135 : vector<2x32xf32>
    %137 = arith.mulf %132, %136 : vector<2x32xf32>
    %138 = vector.extract_strided_slice %8 {offsets = [6, 0], sizes = [2, 128], strides = [1, 1]} : vector<16x128xf32> to vector<2x128xf32>
    %139 = arith.truncf %117 : vector<2x32xf32> to vector<2x32xbf16>
    %cst_30 = arith.constant dense<0.000000e+00> : vector<2x128xf32>
    %140 = tpu.matmul %139, %10, %cst_30 {dimension_numbers = #tpu.dot_dimension_numbers<[1], [0], [0], [1], [0, 0, 1, 1], [], []>} : vector<2x32xbf16>, vector<32x128xbf16>, vector<2x128xf32> -> vector<2x128xf32>
    %141 = arith.addf %138, %140 : vector<2x128xf32>
    %142 = vector.extract_strided_slice %141 {offsets = [0, 0], sizes = [2, 96], strides = [1, 1]} : vector<2x128xf32> to vector<2x96xf32>
    %143 = arith.negf %142 : vector<2x96xf32>
    %144 = math.exp %143 : vector<2x96xf32>
    %cst_31 = arith.constant 1.000000e+00 : f32
    %145 = vector.broadcast %cst_31 : f32 to vector<2x96xf32>
    %146 = arith.addf %145, %144 : vector<2x96xf32>
    %147 = arith.divf %145, %146 : vector<2x96xf32>
    %148 = vector.extract_strided_slice %141 {offsets = [0, 96], sizes = [2, 32], strides = [1, 1]} : vector<2x128xf32> to vector<2x32xf32>
    %149 = math.tanh %148 : vector<2x32xf32>
    %150 = vector.extract_strided_slice %147 {offsets = [0, 0], sizes = [2, 32], strides = [1, 1]} : vector<2x96xf32> to vector<2x32xf32>
    %151 = vector.extract_strided_slice %147 {offsets = [0, 32], sizes = [2, 32], strides = [1, 1]} : vector<2x96xf32> to vector<2x32xf32>
    %152 = vector.extract_strided_slice %147 {offsets = [0, 64], sizes = [2, 32], strides = [1, 1]} : vector<2x96xf32> to vector<2x32xf32>
    %153 = arith.mulf %151, %115 : vector<2x32xf32>
    %154 = arith.mulf %150, %149 : vector<2x32xf32>
    %155 = arith.addf %153, %154 : vector<2x32xf32>
    %156 = math.tanh %155 : vector<2x32xf32>
    %157 = arith.mulf %152, %156 : vector<2x32xf32>
    %158 = tpu.concatenate %157, %137 in 1 : vector<2x32xf32>, vector<2x32xf32> -> vector<2x64xf32>
    %159 = arith.truncf %158 : vector<2x64xf32> to vector<2x64xbf16>
    %cst_32 = arith.constant dense<0.000000e+00> : vector<2x128xf32>
    %160 = tpu.matmul %159, %12, %cst_32 {dimension_numbers = #tpu.dot_dimension_numbers<[1], [0], [0], [1], [0, 0, 1, 1], [], []>} : vector<2x64xbf16>, vector<64x128xbf16>, vector<2x128xf32> -> vector<2x128xf32>
    %161 = arith.addf %160, %16 : vector<2x128xf32>
    %162 = vector.extract_strided_slice %161 {offsets = [0, 0], sizes = [2, 96], strides = [1, 1]} : vector<2x128xf32> to vector<2x96xf32>
    %163 = arith.negf %162 : vector<2x96xf32>
    %164 = math.exp %163 : vector<2x96xf32>
    %cst_33 = arith.constant 1.000000e+00 : f32
    %165 = vector.broadcast %cst_33 : f32 to vector<2x96xf32>
    %166 = arith.addf %165, %164 : vector<2x96xf32>
    %167 = arith.divf %165, %166 : vector<2x96xf32>
    %168 = vector.extract_strided_slice %161 {offsets = [0, 96], sizes = [2, 32], strides = [1, 1]} : vector<2x128xf32> to vector<2x32xf32>
    %169 = math.tanh %168 : vector<2x32xf32>
    %170 = vector.extract_strided_slice %167 {offsets = [0, 0], sizes = [2, 32], strides = [1, 1]} : vector<2x96xf32> to vector<2x32xf32>
    %171 = vector.extract_strided_slice %167 {offsets = [0, 32], sizes = [2, 32], strides = [1, 1]} : vector<2x96xf32> to vector<2x32xf32>
    %172 = vector.extract_strided_slice %167 {offsets = [0, 64], sizes = [2, 32], strides = [1, 1]} : vector<2x96xf32> to vector<2x32xf32>
    %173 = arith.mulf %171, %135 : vector<2x32xf32>
    %174 = arith.mulf %170, %169 : vector<2x32xf32>
    %175 = arith.addf %173, %174 : vector<2x32xf32>
    %176 = math.tanh %175 : vector<2x32xf32>
    %177 = arith.mulf %172, %176 : vector<2x32xf32>
    %178 = vector.extract_strided_slice %8 {offsets = [8, 0], sizes = [2, 128], strides = [1, 1]} : vector<16x128xf32> to vector<2x128xf32>
    %179 = arith.truncf %157 : vector<2x32xf32> to vector<2x32xbf16>
    %cst_34 = arith.constant dense<0.000000e+00> : vector<2x128xf32>
    %180 = tpu.matmul %179, %10, %cst_34 {dimension_numbers = #tpu.dot_dimension_numbers<[1], [0], [0], [1], [0, 0, 1, 1], [], []>} : vector<2x32xbf16>, vector<32x128xbf16>, vector<2x128xf32> -> vector<2x128xf32>
    %181 = arith.addf %178, %180 : vector<2x128xf32>
    %182 = vector.extract_strided_slice %181 {offsets = [0, 0], sizes = [2, 96], strides = [1, 1]} : vector<2x128xf32> to vector<2x96xf32>
    %183 = arith.negf %182 : vector<2x96xf32>
    %184 = math.exp %183 : vector<2x96xf32>
    %cst_35 = arith.constant 1.000000e+00 : f32
    %185 = vector.broadcast %cst_35 : f32 to vector<2x96xf32>
    %186 = arith.addf %185, %184 : vector<2x96xf32>
    %187 = arith.divf %185, %186 : vector<2x96xf32>
    %188 = vector.extract_strided_slice %181 {offsets = [0, 96], sizes = [2, 32], strides = [1, 1]} : vector<2x128xf32> to vector<2x32xf32>
    %189 = math.tanh %188 : vector<2x32xf32>
    %190 = vector.extract_strided_slice %187 {offsets = [0, 0], sizes = [2, 32], strides = [1, 1]} : vector<2x96xf32> to vector<2x32xf32>
    %191 = vector.extract_strided_slice %187 {offsets = [0, 32], sizes = [2, 32], strides = [1, 1]} : vector<2x96xf32> to vector<2x32xf32>
    %192 = vector.extract_strided_slice %187 {offsets = [0, 64], sizes = [2, 32], strides = [1, 1]} : vector<2x96xf32> to vector<2x32xf32>
    %193 = arith.mulf %191, %155 : vector<2x32xf32>
    %194 = arith.mulf %190, %189 : vector<2x32xf32>
    %195 = arith.addf %193, %194 : vector<2x32xf32>
    %196 = math.tanh %195 : vector<2x32xf32>
    %197 = arith.mulf %192, %196 : vector<2x32xf32>
    %198 = tpu.concatenate %197, %177 in 1 : vector<2x32xf32>, vector<2x32xf32> -> vector<2x64xf32>
    %199 = arith.truncf %198 : vector<2x64xf32> to vector<2x64xbf16>
    %cst_36 = arith.constant dense<0.000000e+00> : vector<2x128xf32>
    %200 = tpu.matmul %199, %12, %cst_36 {dimension_numbers = #tpu.dot_dimension_numbers<[1], [0], [0], [1], [0, 0, 1, 1], [], []>} : vector<2x64xbf16>, vector<64x128xbf16>, vector<2x128xf32> -> vector<2x128xf32>
    %201 = arith.addf %200, %16 : vector<2x128xf32>
    %202 = vector.extract_strided_slice %201 {offsets = [0, 0], sizes = [2, 96], strides = [1, 1]} : vector<2x128xf32> to vector<2x96xf32>
    %203 = arith.negf %202 : vector<2x96xf32>
    %204 = math.exp %203 : vector<2x96xf32>
    %cst_37 = arith.constant 1.000000e+00 : f32
    %205 = vector.broadcast %cst_37 : f32 to vector<2x96xf32>
    %206 = arith.addf %205, %204 : vector<2x96xf32>
    %207 = arith.divf %205, %206 : vector<2x96xf32>
    %208 = vector.extract_strided_slice %201 {offsets = [0, 96], sizes = [2, 32], strides = [1, 1]} : vector<2x128xf32> to vector<2x32xf32>
    %209 = math.tanh %208 : vector<2x32xf32>
    %210 = vector.extract_strided_slice %207 {offsets = [0, 0], sizes = [2, 32], strides = [1, 1]} : vector<2x96xf32> to vector<2x32xf32>
    %211 = vector.extract_strided_slice %207 {offsets = [0, 32], sizes = [2, 32], strides = [1, 1]} : vector<2x96xf32> to vector<2x32xf32>
    %212 = vector.extract_strided_slice %207 {offsets = [0, 64], sizes = [2, 32], strides = [1, 1]} : vector<2x96xf32> to vector<2x32xf32>
    %213 = arith.mulf %211, %175 : vector<2x32xf32>
    %214 = arith.mulf %210, %209 : vector<2x32xf32>
    %215 = arith.addf %213, %214 : vector<2x32xf32>
    %216 = math.tanh %215 : vector<2x32xf32>
    %217 = arith.mulf %212, %216 : vector<2x32xf32>
    %218 = vector.extract_strided_slice %8 {offsets = [10, 0], sizes = [2, 128], strides = [1, 1]} : vector<16x128xf32> to vector<2x128xf32>
    %219 = arith.truncf %197 : vector<2x32xf32> to vector<2x32xbf16>
    %cst_38 = arith.constant dense<0.000000e+00> : vector<2x128xf32>
    %220 = tpu.matmul %219, %10, %cst_38 {dimension_numbers = #tpu.dot_dimension_numbers<[1], [0], [0], [1], [0, 0, 1, 1], [], []>} : vector<2x32xbf16>, vector<32x128xbf16>, vector<2x128xf32> -> vector<2x128xf32>
    %221 = arith.addf %218, %220 : vector<2x128xf32>
    %222 = vector.extract_strided_slice %221 {offsets = [0, 0], sizes = [2, 96], strides = [1, 1]} : vector<2x128xf32> to vector<2x96xf32>
    %223 = arith.negf %222 : vector<2x96xf32>
    %224 = math.exp %223 : vector<2x96xf32>
    %cst_39 = arith.constant 1.000000e+00 : f32
    %225 = vector.broadcast %cst_39 : f32 to vector<2x96xf32>
    %226 = arith.addf %225, %224 : vector<2x96xf32>
    %227 = arith.divf %225, %226 : vector<2x96xf32>
    %228 = vector.extract_strided_slice %221 {offsets = [0, 96], sizes = [2, 32], strides = [1, 1]} : vector<2x128xf32> to vector<2x32xf32>
    %229 = math.tanh %228 : vector<2x32xf32>
    %230 = vector.extract_strided_slice %227 {offsets = [0, 0], sizes = [2, 32], strides = [1, 1]} : vector<2x96xf32> to vector<2x32xf32>
    %231 = vector.extract_strided_slice %227 {offsets = [0, 32], sizes = [2, 32], strides = [1, 1]} : vector<2x96xf32> to vector<2x32xf32>
    %232 = vector.extract_strided_slice %227 {offsets = [0, 64], sizes = [2, 32], strides = [1, 1]} : vector<2x96xf32> to vector<2x32xf32>
    %233 = arith.mulf %231, %195 : vector<2x32xf32>
    %234 = arith.mulf %230, %229 : vector<2x32xf32>
    %235 = arith.addf %233, %234 : vector<2x32xf32>
    %236 = math.tanh %235 : vector<2x32xf32>
    %237 = arith.mulf %232, %236 : vector<2x32xf32>
    %238 = tpu.concatenate %237, %217 in 1 : vector<2x32xf32>, vector<2x32xf32> -> vector<2x64xf32>
    %239 = arith.truncf %238 : vector<2x64xf32> to vector<2x64xbf16>
    %cst_40 = arith.constant dense<0.000000e+00> : vector<2x128xf32>
    %240 = tpu.matmul %239, %12, %cst_40 {dimension_numbers = #tpu.dot_dimension_numbers<[1], [0], [0], [1], [0, 0, 1, 1], [], []>} : vector<2x64xbf16>, vector<64x128xbf16>, vector<2x128xf32> -> vector<2x128xf32>
    %241 = arith.addf %240, %16 : vector<2x128xf32>
    %242 = vector.extract_strided_slice %241 {offsets = [0, 0], sizes = [2, 96], strides = [1, 1]} : vector<2x128xf32> to vector<2x96xf32>
    %243 = arith.negf %242 : vector<2x96xf32>
    %244 = math.exp %243 : vector<2x96xf32>
    %cst_41 = arith.constant 1.000000e+00 : f32
    %245 = vector.broadcast %cst_41 : f32 to vector<2x96xf32>
    %246 = arith.addf %245, %244 : vector<2x96xf32>
    %247 = arith.divf %245, %246 : vector<2x96xf32>
    %248 = vector.extract_strided_slice %241 {offsets = [0, 96], sizes = [2, 32], strides = [1, 1]} : vector<2x128xf32> to vector<2x32xf32>
    %249 = math.tanh %248 : vector<2x32xf32>
    %250 = vector.extract_strided_slice %247 {offsets = [0, 0], sizes = [2, 32], strides = [1, 1]} : vector<2x96xf32> to vector<2x32xf32>
    %251 = vector.extract_strided_slice %247 {offsets = [0, 32], sizes = [2, 32], strides = [1, 1]} : vector<2x96xf32> to vector<2x32xf32>
    %252 = vector.extract_strided_slice %247 {offsets = [0, 64], sizes = [2, 32], strides = [1, 1]} : vector<2x96xf32> to vector<2x32xf32>
    %253 = arith.mulf %251, %215 : vector<2x32xf32>
    %254 = arith.mulf %250, %249 : vector<2x32xf32>
    %255 = arith.addf %253, %254 : vector<2x32xf32>
    %256 = math.tanh %255 : vector<2x32xf32>
    %257 = arith.mulf %252, %256 : vector<2x32xf32>
    %258 = vector.extract_strided_slice %8 {offsets = [12, 0], sizes = [2, 128], strides = [1, 1]} : vector<16x128xf32> to vector<2x128xf32>
    %259 = arith.truncf %237 : vector<2x32xf32> to vector<2x32xbf16>
    %cst_42 = arith.constant dense<0.000000e+00> : vector<2x128xf32>
    %260 = tpu.matmul %259, %10, %cst_42 {dimension_numbers = #tpu.dot_dimension_numbers<[1], [0], [0], [1], [0, 0, 1, 1], [], []>} : vector<2x32xbf16>, vector<32x128xbf16>, vector<2x128xf32> -> vector<2x128xf32>
    %261 = arith.addf %258, %260 : vector<2x128xf32>
    %262 = vector.extract_strided_slice %261 {offsets = [0, 0], sizes = [2, 96], strides = [1, 1]} : vector<2x128xf32> to vector<2x96xf32>
    %263 = arith.negf %262 : vector<2x96xf32>
    %264 = math.exp %263 : vector<2x96xf32>
    %cst_43 = arith.constant 1.000000e+00 : f32
    %265 = vector.broadcast %cst_43 : f32 to vector<2x96xf32>
    %266 = arith.addf %265, %264 : vector<2x96xf32>
    %267 = arith.divf %265, %266 : vector<2x96xf32>
    %268 = vector.extract_strided_slice %261 {offsets = [0, 96], sizes = [2, 32], strides = [1, 1]} : vector<2x128xf32> to vector<2x32xf32>
    %269 = math.tanh %268 : vector<2x32xf32>
    %270 = vector.extract_strided_slice %267 {offsets = [0, 0], sizes = [2, 32], strides = [1, 1]} : vector<2x96xf32> to vector<2x32xf32>
    %271 = vector.extract_strided_slice %267 {offsets = [0, 32], sizes = [2, 32], strides = [1, 1]} : vector<2x96xf32> to vector<2x32xf32>
    %272 = vector.extract_strided_slice %267 {offsets = [0, 64], sizes = [2, 32], strides = [1, 1]} : vector<2x96xf32> to vector<2x32xf32>
    %273 = arith.mulf %271, %235 : vector<2x32xf32>
    %274 = arith.mulf %270, %269 : vector<2x32xf32>
    %275 = arith.addf %273, %274 : vector<2x32xf32>
    %276 = math.tanh %275 : vector<2x32xf32>
    %277 = arith.mulf %272, %276 : vector<2x32xf32>
    %278 = tpu.concatenate %277, %257 in 1 : vector<2x32xf32>, vector<2x32xf32> -> vector<2x64xf32>
    %279 = arith.truncf %278 : vector<2x64xf32> to vector<2x64xbf16>
    %cst_44 = arith.constant dense<0.000000e+00> : vector<2x128xf32>
    %280 = tpu.matmul %279, %12, %cst_44 {dimension_numbers = #tpu.dot_dimension_numbers<[1], [0], [0], [1], [0, 0, 1, 1], [], []>} : vector<2x64xbf16>, vector<64x128xbf16>, vector<2x128xf32> -> vector<2x128xf32>
    %281 = arith.addf %280, %16 : vector<2x128xf32>
    %282 = vector.extract_strided_slice %281 {offsets = [0, 0], sizes = [2, 96], strides = [1, 1]} : vector<2x128xf32> to vector<2x96xf32>
    %283 = arith.negf %282 : vector<2x96xf32>
    %284 = math.exp %283 : vector<2x96xf32>
    %cst_45 = arith.constant 1.000000e+00 : f32
    %285 = vector.broadcast %cst_45 : f32 to vector<2x96xf32>
    %286 = arith.addf %285, %284 : vector<2x96xf32>
    %287 = arith.divf %285, %286 : vector<2x96xf32>
    %288 = vector.extract_strided_slice %281 {offsets = [0, 96], sizes = [2, 32], strides = [1, 1]} : vector<2x128xf32> to vector<2x32xf32>
    %289 = math.tanh %288 : vector<2x32xf32>
    %290 = vector.extract_strided_slice %287 {offsets = [0, 0], sizes = [2, 32], strides = [1, 1]} : vector<2x96xf32> to vector<2x32xf32>
    %291 = vector.extract_strided_slice %287 {offsets = [0, 32], sizes = [2, 32], strides = [1, 1]} : vector<2x96xf32> to vector<2x32xf32>
    %292 = vector.extract_strided_slice %287 {offsets = [0, 64], sizes = [2, 32], strides = [1, 1]} : vector<2x96xf32> to vector<2x32xf32>
    %293 = arith.mulf %291, %255 : vector<2x32xf32>
    %294 = arith.mulf %290, %289 : vector<2x32xf32>
    %295 = arith.addf %293, %294 : vector<2x32xf32>
    %296 = math.tanh %295 : vector<2x32xf32>
    %297 = arith.mulf %292, %296 : vector<2x32xf32>
    %298 = vector.extract_strided_slice %8 {offsets = [14, 0], sizes = [2, 128], strides = [1, 1]} : vector<16x128xf32> to vector<2x128xf32>
    %299 = arith.truncf %277 : vector<2x32xf32> to vector<2x32xbf16>
    %cst_46 = arith.constant dense<0.000000e+00> : vector<2x128xf32>
    %300 = tpu.matmul %299, %10, %cst_46 {dimension_numbers = #tpu.dot_dimension_numbers<[1], [0], [0], [1], [0, 0, 1, 1], [], []>} : vector<2x32xbf16>, vector<32x128xbf16>, vector<2x128xf32> -> vector<2x128xf32>
    %301 = arith.addf %298, %300 : vector<2x128xf32>
    %302 = vector.extract_strided_slice %301 {offsets = [0, 0], sizes = [2, 96], strides = [1, 1]} : vector<2x128xf32> to vector<2x96xf32>
    %303 = arith.negf %302 : vector<2x96xf32>
    %304 = math.exp %303 : vector<2x96xf32>
    %cst_47 = arith.constant 1.000000e+00 : f32
    %305 = vector.broadcast %cst_47 : f32 to vector<2x96xf32>
    %306 = arith.addf %305, %304 : vector<2x96xf32>
    %307 = arith.divf %305, %306 : vector<2x96xf32>
    %308 = vector.extract_strided_slice %301 {offsets = [0, 96], sizes = [2, 32], strides = [1, 1]} : vector<2x128xf32> to vector<2x32xf32>
    %309 = math.tanh %308 : vector<2x32xf32>
    %310 = vector.extract_strided_slice %307 {offsets = [0, 0], sizes = [2, 32], strides = [1, 1]} : vector<2x96xf32> to vector<2x32xf32>
    %311 = vector.extract_strided_slice %307 {offsets = [0, 32], sizes = [2, 32], strides = [1, 1]} : vector<2x96xf32> to vector<2x32xf32>
    %312 = vector.extract_strided_slice %307 {offsets = [0, 64], sizes = [2, 32], strides = [1, 1]} : vector<2x96xf32> to vector<2x32xf32>
    %313 = arith.mulf %311, %275 : vector<2x32xf32>
    %314 = arith.mulf %310, %309 : vector<2x32xf32>
    %315 = arith.addf %313, %314 : vector<2x32xf32>
    %316 = math.tanh %315 : vector<2x32xf32>
    %317 = arith.mulf %312, %316 : vector<2x32xf32>
    %318 = tpu.concatenate %317, %297 in 1 : vector<2x32xf32>, vector<2x32xf32> -> vector<2x64xf32>
    %319 = arith.truncf %318 : vector<2x64xf32> to vector<2x64xbf16>
    %cst_48 = arith.constant dense<0.000000e+00> : vector<2x128xf32>
    %320 = tpu.matmul %319, %12, %cst_48 {dimension_numbers = #tpu.dot_dimension_numbers<[1], [0], [0], [1], [0, 0, 1, 1], [], []>} : vector<2x64xbf16>, vector<64x128xbf16>, vector<2x128xf32> -> vector<2x128xf32>
    %321 = arith.addf %320, %16 : vector<2x128xf32>
    %322 = vector.extract_strided_slice %321 {offsets = [0, 0], sizes = [2, 96], strides = [1, 1]} : vector<2x128xf32> to vector<2x96xf32>
    %323 = arith.negf %322 : vector<2x96xf32>
    %324 = math.exp %323 : vector<2x96xf32>
    %cst_49 = arith.constant 1.000000e+00 : f32
    %325 = vector.broadcast %cst_49 : f32 to vector<2x96xf32>
    %326 = arith.addf %325, %324 : vector<2x96xf32>
    %327 = arith.divf %325, %326 : vector<2x96xf32>
    %328 = vector.extract_strided_slice %321 {offsets = [0, 96], sizes = [2, 32], strides = [1, 1]} : vector<2x128xf32> to vector<2x32xf32>
    %329 = math.tanh %328 : vector<2x32xf32>
    %330 = vector.extract_strided_slice %327 {offsets = [0, 0], sizes = [2, 32], strides = [1, 1]} : vector<2x96xf32> to vector<2x32xf32>
    %331 = vector.extract_strided_slice %327 {offsets = [0, 32], sizes = [2, 32], strides = [1, 1]} : vector<2x96xf32> to vector<2x32xf32>
    %332 = vector.extract_strided_slice %327 {offsets = [0, 64], sizes = [2, 32], strides = [1, 1]} : vector<2x96xf32> to vector<2x32xf32>
    %333 = arith.mulf %331, %295 : vector<2x32xf32>
    %334 = arith.mulf %330, %329 : vector<2x32xf32>
    %335 = arith.addf %333, %334 : vector<2x32xf32>
    %336 = math.tanh %335 : vector<2x32xf32>
    %337 = arith.mulf %332, %336 : vector<2x32xf32>
    %c0_50 = arith.constant 0 : index
    %c0_51 = arith.constant 0 : index
    %c0_52 = arith.constant 0 : index
    %338 = vector.load %arg7[%c0_50, %c0_51, %c0_52] : memref<1x2x32xf32, #tpu.memory_space<vmem>>, vector<1x2x32xf32>
    %339 = vector.shape_cast %338 : vector<1x2x32xf32> to vector<2x32xf32>
    %340 = vector.shape_cast %337 : vector<2x32xf32> to vector<1x2x32xf32>
    tpu.vector_store %arg7[%c0_50, %c0_51, %c0_52], %340 {strides = array<i32>} : memref<1x2x32xf32, #tpu.memory_space<vmem>>, vector<1x2x32xf32>,
    return
  }
  func.func @transform_0(%arg0: i32) -> (i32, i32, i32) {
    %c0_i32 = arith.constant 0 : i32
    %c0_i32_0 = arith.constant 0 : i32
    %c0_i32_1 = arith.constant 0 : i32
    return %arg0, %c0_i32, %c0_i32_0 : i32, i32, i32
  }
  func.func @transform_1(%arg0: i32) -> (i32, i32, i32) {
    %c0_i32 = arith.constant 0 : i32
    %c0_i32_0 = arith.constant 0 : i32
    %c0_i32_1 = arith.constant 0 : i32
    return %arg0, %c0_i32, %c0_i32_0 : i32, i32, i32
  }
  func.func @transform_2(%arg0: i32) -> (i32, i32, i32) {
    %c0_i32 = arith.constant 0 : i32
    %c0_i32_0 = arith.constant 0 : i32
    %c0_i32_1 = arith.constant 0 : i32
    return %arg0, %c0_i32, %c0_i32_0 : i32, i32, i32
  }
  func.func @transform_3(%arg0: i32) -> (i32, i32, i32) {
    %c0_i32 = arith.constant 0 : i32
    %c0_i32_0 = arith.constant 0 : i32
    %c0_i32_1 = arith.constant 0 : i32
    return %arg0, %c0_i32, %c0_i32_0 : i32, i32, i32
  }
  func.func @transform_4(%arg0: i32) -> (i32, i32, i32) {
    %c0_i32 = arith.constant 0 : i32
    %c0_i32_0 = arith.constant 0 : i32
    %c0_i32_1 = arith.constant 0 : i32
    return %arg0, %c0_i32, %c0_i32_0 : i32, i32, i32
  }
  func.func @transform_5(%arg0: i32) -> (i32, i32, i32) {
    %c0_i32 = arith.constant 0 : i32
    %c0_i32_0 = arith.constant 0 : i32
    %c0_i32_1 = arith.constant 0 : i32
    return %arg0, %c0_i32, %c0_i32_0 : i32, i32, i32
  }
  func.func @transform_6(%arg0: i32) -> (i32, i32, i32) {
    %c0_i32 = arith.constant 0 : i32
    %c0_i32_0 = arith.constant 0 : i32
    %c0_i32_1 = arith.constant 0 : i32
    return %arg0, %c0_i32, %c0_i32_0 : i32, i32, i32
  }
}

</mosaic_0001>

<bundles_post_ra>
// kernel: tpu_custom_call.1
= control target key start
LH: loop header
LB: loop body
LE: loop exit
PB: predicated region body
PF: predicated region fallthrough
CT: control target
= control target key end

     0   :  { %s2523_s0 = inlined_call_operand.vmem [shape: bf16[2,16,4], index: 0, kind: input, shape index: {}]   ;;  %s2524_s1 = inlined_call_operand.vmem [shape: bf16[2,4,128], index: 1, kind: input, shape index: {}]   ;;  %s2525_s2 = inlined_call_operand.hbm [shape: bf16[2,32,128], index: 2, kind: input, shape index: {}]   ;;  %s2526_s3 = inlined_call_operand.vmem [shape: f32[2,1,128], index: 3, kind: input, shape index: {}]   ;;  %s2527_s4 = inlined_call_operand.hbm [shape: bf16[2,64,128], index: 4, kind: input, shape index: {}]   ;;  %s2528_s5 = inlined_call_operand.vmem [shape: f32[2,1,128], index: 5, kind: input, shape index: {}]   ;;  %s2529_s6 = inlined_call_operand.hbm [shape: f32[2,2,32], index: 6, kind: output, shape index: {}]  }
   0x1   :  { %2534 = sst [smem:[#allocation15_spill]] %s2525_s2 }
   0x2   :  { %11 = vsyncpa [#allocation3], 0 }
   0x3   :  { %13 = vsyncpa [#allocation3 + $0x1], 0 }
   0x4   :  { %14 = vsyncpa [#allocation6], 0 }
   0x5   :  { %16 = vsyncpa [#allocation6 + $0x1], 0 }
   0x6   :  { %17 = vsyncpa [#allocation4], 0 }
   0x7   :  { %19 = vsyncpa [#allocation4 + $0x1], 0  ;;  %s2098_s21 = smov 0   ;;  %s2100_s22 = smov 0  }
   0x8   :  { %s2102_s23 = smov 0   ;;  %s2104_s24 = smov 0  }
   0x9 LB: > { %2535 = sst [smem:[#allocation11_spill]] %s2051_s23  ;;  %s2119_s25 = sadd.s32 4294967295, %s2055_s24   ;;  %s2055_s24 = sphi %s2104_s24, %s2548_s24   ;;  %s2051_s23 = sphi %s2102_s23, %s2553_s23   ;;  %s2047_s22 = sphi %s2100_s22, %s2552_s22   ;;  %s2043_s21 = sphi %s2098_s21, %s2551_s21  }
   0xa   : > { %2536 = sst [smem:[#allocation12_spill]] %s2055_s24  ;;  %s1647_s26 = sadd.s32 4294967294, %s2055_s24  }
   0xb   : > { %s2123_s27 = sadd.s32 1, %s2055_s24   ;;  %s84_s28 = sadd.s32 1, %s2051_s23 }
   0xc   : > { %2537 = sst [smem:[#allocation13_spill]] %s2123_s27  ;;  %s81_s29 = ssub.s32 %s2055_s24, %s2123_s27 }
   0xd   : > { %p91_p0 = scmp.ne.s32.totalorder %s2051_s23, %s2047_s22  ;;  %p82_p1 = scmp.eq.s32.totalorder %s81_s29, 0 }
   0xe   : > { %p92_p2 = scmp.eq.s32.totalorder %s2055_s24, 0  ;;  %p97_p3 = scmp.ne.s32.totalorder %s2047_s22, %s2043_s21 }
   0xf   : > { %p98_p4 = scmp.eq.s32.totalorder %s2119_s25, 0  ;;  %p199_p7 = scmp.eq.s32.totalorder %s2119_s25, 1 }
  0x10   : > { %s2135_s30 = scalar_select %p82_p1, %s2051_s23, %s84_s28  }
  0x11   : > { %p2137_p5 = por %p92_p2, %p91_p0  ;;  %p2141_p6 = por %p98_p4, %p97_p3 }
  0x12   : > { %2538 = sst [smem:[#allocation14_spill]] %s2135_s30  ;;  %p205_p8 = scmp.eq.s32.totalorder %s1647_s26, 1 }
  0x13   : > { %p1754_p10 = scmp.lt.s32.totalorder %s2055_s24, 2  ;;  %p2148_p11 = por %p199_p7, %p91_p0 }
  0x14   : > { %p2152_p12 = por %p205_p8, %p97_p3  ;;  %s2157_s11 = sand.u32 1, %s2051_s23  }
  0x15   : > { %s1727_s12 = sshll.u32 %s2055_s24, 4  ;;  %s1650_s13 = sshll.u32 %s2157_s11, 4 }
  0x16   : > { %s2543_s2 = sld [smem:[#allocation15_spill]]  ;;  %s244_s18 = scalar_lea.vmem [#allocation2], %s1650_s13 }
  0x17   : > { %s252_s19 = sshll.u32 %s244_s18, 4  ;;  %p2166_p13 = pnand %p1754_p10, %p2137_p5  ;;  %s253_s19 = int_to_ptr.vmem [resolvable:$true] %s252_s19 }
  0x18   : > { %p1656_p0 = scmp.ge.s32.totalorder %s2055_s24, 1  ;;  %p294_p1 = scmp.lt.s32.totalorder %s2055_s24, 3 }
  0x19   : > { %s241_s26 = scalar_lea.sflag [#allocation3], %s2157_s11  ;;  %p1929_p3 = pneg %p2166_p13 }
  0x1c   : > { %s249_s16 = scalar_lea.hbm %s2543_s2, %s1727_s12  ;;  %s1932_s13 = scalar_lea.hbm %s2543_s2, 32 }
  0x1d   : > { %s250_s17 = sshll.u32 %s249_s16, 4  ;;  %s251_s17 = int_to_ptr.hbm [resolvable:$true] %s250_s17 }
  0x1e   : > { %s1925_s28 = sshra.s32 %s251_s17, 4  ;;  %s1926_s28 = int_to_ptr.hbm [resolvable:$true] %s1925_s28 }
  0x1f   : > { %s1927_s29 = scalar_lea.hbm %s1926_s28, 16  ;;  %p1933_p5 = scmp.lt.s32.totalorder %s1926_s28, %s2543_s2 }
  0x20   : > { %p1928_p2 = scmp.ne.s32.totalorder %s1926_s28, %s1927_s29  ;;  %p1934_p8 = scmp.lt.s32.totalorder %s1932_s13, %s1927_s29 }
  0x22   : > { %p1930_p4 = pnand %p1929_p3, %p1928_p2  ;;  %p1935_p10 = por %p1934_p8, %p1933_p5 }
  0x24   : > { %p1931_p7 = pneg %p1930_p4 }
  0x26   : > { %p1936_p9 = pnand %p1935_p10, %p1931_p7 }
  0x28   : > { %1939 = shalt.err (!%p1936_p9)
}
  0x29   : > { %s2057_s16 = smov 64   ;;  %s2058_s18 = smov 4  }
  0x2a   : > { %1746 = dma.hbm_to_vmem [thread:$0]  (!%p2166_p13), %s251_s17, 256, %s253_s19, %s241_s26, %s2057_s16, %s2057_s16, %s2058_s18  }
  0x2b   : > { %p2190_p2 = pnand %p1656_p0, %p294_p1  ;;  %s1653_s28 = sshll.u32 %s2157_s11, 5 }
  0x2c   : > { %s1728_s29 = sshll.u32 %s2055_s24, 5  ;;  %s272_s2 = scalar_lea.vmem [#allocation5], %s1653_s28 }
  0x2d   : > { %s277_s14 = scalar_lea.hbm %s2527_s4, %s1728_s29  ;;  %s280_s30 = sshll.u32 %s272_s2, 4  ;;  %s281_s30 = int_to_ptr.vmem [resolvable:$true] %s280_s30 }
  0x2e   : > { %s278_s15 = sshll.u32 %s277_s14, 4  ;;  %s269_s23 = scalar_lea.sflag [#allocation6], %s2157_s11  ;;  %s279_s15 = int_to_ptr.hbm [resolvable:$true] %s278_s15 }
  0x2f   : > { %s1955_s27 = sshra.s32 %s279_s15, 4  ;;  %s1962_s24 = scalar_lea.hbm %s2527_s4, 64  ;;  %s1956_s27 = int_to_ptr.hbm [resolvable:$true] %s1955_s27 }
  0x30   : > { %s1957_s17 = scalar_lea.hbm %s1956_s27, 32  ;;  %p1963_p4 = scmp.lt.s32.totalorder %s1956_s27, %s2527_s4 }
  0x31   : > { %p1958_p9 = scmp.ne.s32.totalorder %s1956_s27, %s1957_s17  ;;  %p1964_p7 = scmp.lt.s32.totalorder %s1962_s24, %s1957_s17 }
  0x33   : > { %p1960_p0 = pnand %p1958_p9, %p1929_p3  ;;  %p1965_p5 = por %p1964_p7, %p1963_p4 }
  0x35   : > { %p1961_p1 = pneg %p1960_p0 }
  0x37   : > { %p1966_p8 = pnand %p1965_p5, %p1961_p1 }
  0x39   : > { %1969 = shalt.err (!%p1966_p8)
}
  0x3a   : > { %1749 = dma.hbm_to_vmem [thread:$0]  (!%p2166_p13), %s279_s15, 512, %s281_s30, %s269_s23, %s2057_s16, %s2057_s16, %s2058_s18  }
  0x3b   : > { %298 = sbr.rel (%p2190_p2) target bundleno = 5436 (0x153c), region = 44  ;;  %s2214_s2 = sand.u32 (!%p2190_p2), 1, %s2047_s22  }
  0x3c   : > { %s1657_s11 = sshll.u32 (!%p2190_p2), %s2214_s2, 4  ;;  %s301_s28 = scalar_lea.sflag (!%p2190_p2), [#allocation3], %s2214_s2 }
  0x3d   : > { %s304_s13 = scalar_lea.vmem (!%p2190_p2), [#allocation2], %s1657_s11 }
  0x40   : > { %2030 = dma.done.wait (%p2141_p6), %s301_s28, 256  }
  0x41   : > { %2032 = vsyncadd (%p2141_p6), %s301_s28, 4294967040  ;;  %s1658_s23 = sshll.u32 %s2214_s2, 5  ;;  %s311_s24 = scalar_lea.sflag [#allocation6], %s2214_s2 }
  0x42   : > { %s2224_s27 = scalar_lea.vmem [#allocation5], %s1658_s23 }
  0x43   : > { %2034 = dma.done.wait (%p2141_p6), %s311_s24, 512  }
  0x44   : > { %2036 = vsyncadd (%p2141_p6), %s311_s24, 4294966784  ;;  %p364_p13 = scmp.lt.s32.totalorder %s2119_s25, 1  ;;  %vm396_vm0 = vcmask 1041408   ;;  %v2243_v2 = vld [vmem:[%s304_s13 + $0x8] sm:$0xff]  ;;  %vm392_vm1 = vcmask 31744   ;;  %v2249_v4 = vld [vmem:[%s304_s13] sm:$0xff] }
  0x45   : > { %452 = vmatpush.bf16.msra.mxu1 %v2243_v2  ;;  %594 = vmatpush.bf16.msra.mxu3 %v2243_v2  ;;  %v2059_v5 = vmov 0   ;;  %s2060_s13 = smov 32   ;;  %s2061_s23 = smov 64   ;;  %v2273_v35 = vld [vmem:[%s2224_s27 + $0x18] sm:$0xff]  ;;  %v2277_v36 = vld [vmem:[%s2224_s27 + $0x10] sm:$0xff]  ;;  %v2283_v37 = vld [vmem:[%s2224_s27 + $0x8] sm:$0xff] }
  0x46   : > { %s365_s30 = scalar_select %p364_p13, %s2119_s25, 1  ;;  %535 = vmatpush.bf16.msra.mxu2 %v2273_v35  ;;  %v2291_v38 = vld [vmem:[%s2224_s27] sm:$0xff]  ;;  %vm442_vm6 = vcmask 261120   ;;  %vm527_vm7 = vcmask 523264  }
  0x47   : > { %s2062_s24 = smov 96   ;;  %s1659_s27 = sshll.u32 %s2214_s2, 1 }
  0x48   : > { %s1662_s20 = sshll.u32 %s365_s30, 1  ;;  %s1729_s14 = sshll.u32 %s365_s30, 3 }
  0x49   : > { %s372_s7 = scalar_lea.vmem %s2524_s1, %s1662_s20  ;;  %s2238_s19 = scalar_lea.vmem %s2528_s5, %s365_s30  ;;  %453 = vmatpush.bf16.msra.mxu1 %v2249_v4  ;;  %595 = vmatpush.bf16.msra.mxu3 %v2249_v4 }
  0x4a   : > { %s368_s8 = scalar_lea.vmem %s2523_s0, %s1729_s14  ;;  %v382_v0 = vld [vmem:[%s372_s7] sm:$0x3]  ;;  %s375_s28 = scalar_lea.vmem %s2526_s3, %s365_s30  ;;  %536 = vmatpush.bf16.msra.mxu2 %v2277_v36 }
  0x4b   : > { %v398_v1 = vsel %vm396_vm0, %v382_v0, 0  ;;  %v1730_v3 = vld [vmem:[%s368_s8] sm:$0xff]  ;;  %s1724_s30 = sshll.u32 %s2119_s25, 1  ;;  %s363_s7 = scalar_lea.vmem [#allocation7], %s1659_s27 }
  0x4c   : > { %407 = vmatpush.bf16.msra.mxu0 %v398_v1  ;;  %454 = vmatmul.bf16.vlgmr.msra.gmra.mxu1 %v2059_v5  ;;  %v2258_v6 = vld [vmem:[%s375_s28] ss:$0 sm:$0xff]  ;;  %s1507_s18 = scalar_lea.hbm %s2529_s6, %s1724_s30  ;;  %s1509_s14 = sshll.u32 %s363_s7, 4  ;;  %s1510_s14 = int_to_ptr.vmem [resolvable:$true] %s1509_s14 }
  0x4d   : > { %725 = vmatpush.bf16.msrb.mxu1 %v2243_v2  ;;  %796 = vmatpush.bf16.msrb.mxu3 %v2273_v35  ;;  %v2314_v48 = vld [vmem:[%s2238_s19] ss:$0 sm:$0xff]  ;;  %s1511_s15 = sshll.u32 %s1507_s18, 4  ;;  %s1497_s17 = scalar_lea.sflag [#allocation4], %s2214_s2  ;;  %s1512_s15 = int_to_ptr.hbm [resolvable:$true] %s1511_s15 }
  0x4e   : > { %537 = vmatpush.bf16.msra.mxu2 %v2283_v37  ;;  %s2005_s8 = scalar_lea.hbm %s2529_s6, 4 }
  0x4f   : > { %1667 = vmatmul.msk.bf16.vlgmr.msra.gmra.mxu0 %vm392_vm1, %v1730_v3 }
  0x50   : > { %665 = vmatpush.bf16.msrb.mxu0 %v2273_v35 }
  0x51   : > { %726 = vmatpush.bf16.msrb.mxu1 %v2249_v4  ;;  %797 = vmatpush.bf16.msrb.mxu3 %v2277_v36 }
  0x52   : > { %538 = vmatpush.bf16.msra.mxu2 %v2291_v38 }
  0x54   : > { %666 = vmatpush.bf16.msrb.mxu0 %v2277_v36 }
  0x55   : > { %987 = vmatpush.bf16.msra.mxu1 %v2243_v2  ;;  %798 = vmatpush.bf16.msrb.mxu3 %v2283_v37 }
  0x56   : > { %856 = vmatpush.bf16.msrb.mxu2 %v2243_v2 }
  0x58   : > { %667 = vmatpush.bf16.msrb.mxu0 %v2283_v37 }
  0x59   : > { %988 = vmatpush.bf16.msra.mxu1 %v2249_v4  ;;  %799 = vmatpush.bf16.msrb.mxu3 %v2291_v38 }
  0x5a   : > { %857 = vmatpush.bf16.msrb.mxu2 %v2249_v4 }
  0x5c   : > { %668 = vmatpush.bf16.msrb.mxu0 %v2291_v38 }
  0x60   : > { %927 = vmatpush.bf16.msra.mxu0 %v2273_v35 }
  0x64   : > { %928 = vmatpush.bf16.msra.mxu0 %v2277_v36 }
  0x68   : > { %929 = vmatpush.bf16.msra.mxu0 %v2283_v37 }
  0x6c   : > { %930 = vmatpush.bf16.msra.mxu0 %v2291_v38 }
  0xc9   : > { %v455_v9 = vpop.f32.mrf.mxu1 }
  0xcc   : > { %v409_v7 = vpop.f32.mrf.mxu0 }
  0xcd   : > { %v2261_v8 = vadd.f32 %v2258_v6, %v409_v7 }
  0xcf   : > { %v459_v10 = vadd.f32 %v455_v9, %v2261_v8 }
  0xd1   : > { %1796 = vtanh.f32 %v459_v10  ;;  %v457_v11 = vpop.f32.mrf.mxu1  ;;  %v1676_v13 = vmul.f32 -1.442695, %v459_v10 }
  0xd3   : > { %1798 = vpow2.f32 %v1676_v13 }
  0xd7   : > { %v1797_v12 = vpop.eup %1796 }
  0xd8   : > { %482 = vrot.lane.b32.xlu0 %v1797_v12, %s2060_s13 }
  0xd9   : > { %v1799_v14 = vpop.eup %1798 }
  0xda   : > { %v463_v15 = vadd.f32 1.0, %v1799_v14 }
  0xdc   : > { %1800 = vrcp.f32 %v463_v15  ;;  %v475_v21 = vand.u32 2147483648, %v463_v15  ;;  %vm469_vm3 = vweird.f32 %v463_v15  ;;  %v473_v22 = vand.u32 2147483647, %v463_v15 }
  0xde   : > { %v476_v24 = vor.u32 1.1754944e-38, %v475_v21  ;;  %vm474_vm5 = vcmp.eq.f32.partialorder %v473_v22, 8.507059e+37 }
  0xe2   : > { %v1801_v16 = vpop.eup %1800 }
  0xe3   : > { %v465_v17 = vmul.f32 %v1801_v16, %v463_v15  ;;  %vm470_vm2 = vweird.f32 %v1801_v16 }
  0xe4   : > { %vm471_vm4 = vmor %vm469_vm3, %vm470_vm2 }
  0xe5   : > { %v466_v18 = vsub.f32 1.0, %v465_v17 }
  0xe7   : > { %v467_v19 = vmul.f32 %v1801_v16, %v466_v18 }
  0xe9   : > { %v468_v20 = vadd.f32 %v1801_v16, %v467_v19 }
  0xeb   : > { %v472_v23 = vsel %vm471_vm4, %v1801_v16, %v468_v20 }
  0xec   : > { %v477_v26 = vsel %vm474_vm5, %v476_v24, %v472_v23 }
  0xed   : > { %v480_v28 = vmul.f32 0.0, %v477_v26 }
 0x14a   : > { %v483_v25 = vpop.permute.xlu0 %482 }
 0x14b   : > { %v485_v27 = vmul.f32 %v483_v25, %v477_v26 }
 0x14d   : > { %487 = vrot.lane.b32.xlu0 %v485_v27, %s2060_s13 }
 0x1bf   : > { %v488_v29 = vpop.permute.xlu0 %487 }
 0x1c0   : > { %v2266_v30 = vadd.f32 %v488_v29, %v480_v28 }
 0x1c2   : > { %1802 = vtanh.f32 %v2266_v30  ;;  %v626_v23 = vrot.slane %v2266_v30, 6 }
 0x1c8   : > { %v1803_v31 = vpop.eup %1802 }
 0x1c9   : > { %493 = vrot.lane.b32.xlu1 %v1803_v31, %s2060_s13 }
 0x23b   : > { %v494_v32 = vpop.permute.xlu1 %493 }
 0x23c   : > { %v496_v33 = vmul.f32 %v494_v32, %v477_v26 }
 0x23e   : > { %498 = vrot.lane.b32.xlu1 %v496_v33, %s2061_s23  ;;  %v581_v34 = vpack.c.bf16 %v496_v33, %v496_v33 }
 0x240   : > { %583 = vrot.lane.b32.xlu2 %v581_v34, %s2061_s23 }
 0x29a   : > { %v584_v39 = vpop.permute.xlu2 %583 }
 0x29b   : > { %1695 = vmatmul.msk.bf16.vlgmr.msra.gmra.mxu3 %vm442_vm6, %v584_v39 }
 0x29c   : > { %1052 = vmatpush.bf16.msra.mxu3 %v2273_v35 }
 0x2a0   : > { %1053 = vmatpush.bf16.msra.mxu3 %v2277_v36 }
 0x2a4   : > { %1054 = vmatpush.bf16.msra.mxu3 %v2283_v37 }
 0x2a8   : > { %1055 = vmatpush.bf16.msra.mxu3 %v2291_v38 }
 0x2b0   : > { %v499_v40 = vpop.permute.xlu1 %498 }
 0x2b1   : > { %v501_v41 = vsel %vm442_vm6, %v499_v40, 0.0 }
 0x2b2   : > { %v502_v42 = vpack.c.bf16 %v501_v41, %v501_v41 }
 0x2b4   : > { %1693 = vmatmul.msk.bf16.vlgmr.msra.gmra.mxu2 %vm527_vm7, %v502_v42 }
 0x2b5   : > { %1111 = vmatpush.bf16.msra.mxu2 %v2243_v2 }
 0x2b9   : > { %1112 = vmatpush.bf16.msra.mxu2 %v2249_v4 }
 0x31e   : > { %v597_v43 = vpop.f32.mrf.mxu3 }
 0x31f   : > { %v602_v44 = vrot.slane %v597_v43, 6 }
 0x321   : > { %v604_v45 = vadd.f32 %v602_v44, %v2261_v8 }
 0x323   : > { %1804 = vtanh.f32 %v604_v45  ;;  %v1696_v54 = vmul.f32 -1.442695, %v604_v45 }
 0x326   : > { %v599_v46 = vpop.f32.mrf.mxu3 }
 0x329   : > { %v1805_v47 = vpop.eup %1804 }
 0x32a   : > { %630 = vrot.lane.b32.xlu0 %v1805_v47, %s2060_s13 }
 0x337   : > { %v540_v49 = vpop.f32.mrf.mxu2 }
 0x338   : > { %v541_v50 = vadd.f32 %v2314_v48, %v540_v49 }
 0x33a   : > { %1806 = vtanh.f32 %v541_v50  ;;  %v1694_v53 = vmul.f32 -1.442695, %v541_v50 }
 0x33c   : > { %1808 = vpow2.f32 %v1694_v53 }
 0x33d   : > { %1810 = vpow2.f32 %v1696_v54 }
 0x33f   : > { %v542_v51 = vpop.f32.mrf.mxu2 }
 0x340   : > { %v1807_v52 = vpop.eup %1806 }
 0x341   : > { %566 = vrot.lane.b32.xlu2 %v1807_v52, %s2060_s13 }
 0x342   : > { %v1809_v55 = vpop.eup %1808 }
 0x343   : > { %v1811_v56 = vpop.eup %1810  ;;  %v547_v57 = vadd.f32 1.0, %v1809_v55  ;;  %v2343_v55 = vpop.f32.mrf.mxu0 }
 0x344   : > { %v608_v58 = vadd.f32 1.0, %v1811_v56 }
 0x345   : > { %1812 = vrcp.f32 %v547_v57  ;;  %v559_v7 = vand.u32 2147483648, %v547_v57  ;;  %vm553_vm10 = vweird.f32 %v547_v57  ;;  %v557_v10 = vand.u32 2147483647, %v547_v57 }
 0x346   : > { %1814 = vrcp.f32 %v608_v58  ;;  %v620_v11 = vand.u32 2147483648, %v608_v58  ;;  %vm614_vm12 = vweird.f32 %v608_v58  ;;  %v618_v12 = vand.u32 2147483647, %v608_v58 }
 0x347   : > { %v560_v14 = vor.u32 1.1754944e-38, %v559_v7  ;;  %vm558_vm14 = vcmp.eq.f32.partialorder %v557_v10, 8.507059e+37 }
 0x348   : > { %v621_v16 = vor.u32 1.1754944e-38, %v620_v11  ;;  %vm619_vm15 = vcmp.eq.f32.partialorder %v618_v12, 8.507059e+37 }
 0x34b   : > { %v1813_v59 = vpop.eup %1812 }
 0x34c   : > { %v1815_v60 = vpop.eup %1814  ;;  %v549_v61 = vmul.f32 %v1813_v59, %v547_v57  ;;  %vm554_vm8 = vweird.f32 %v1813_v59 }
 0x34d   : > { %v610_v62 = vmul.f32 %v1815_v60, %v608_v58  ;;  %vm615_vm9 = vweird.f32 %v1815_v60  ;;  %vm555_vm11 = vmor %vm553_vm10, %vm554_vm8 }
 0x34e   : > { %v550_v63 = vsub.f32 1.0, %v549_v61  ;;  %vm616_vm13 = vmor %vm614_vm12, %vm615_vm9 }
 0x34f   : > { %v611_v0 = vsub.f32 1.0, %v610_v62 }
 0x350   : > { %v551_v1 = vmul.f32 %v1813_v59, %v550_v63 }
 0x351   : > { %v612_v3 = vmul.f32 %v1815_v60, %v611_v0 }
 0x352   : > { %v552_v5 = vadd.f32 %v1813_v59, %v551_v1 }
 0x353   : > { %v613_v9 = vadd.f32 %v1815_v60, %v612_v3 }
 0x354   : > { %v556_v13 = vsel %vm555_vm11, %v1813_v59, %v552_v5 }
 0x355   : > { %v617_v15 = vsel %vm616_vm13, %v1815_v60, %v613_v9  ;;  %v561_v17 = vsel %vm558_vm14, %v560_v14, %v556_v13 }
 0x356   : > { %v622_v21 = vsel %vm619_vm15, %v621_v16, %v617_v15  ;;  %v564_v28 = vmul.f32 0.0, %v561_v17 }
 0x357   : > { %v628_v24 = vmul.f32 %v626_v23, %v622_v21 }
 0x39b   : > { %v567_v18 = vpop.permute.xlu2 %566 }
 0x39c   : > { %v569_v19 = vmul.f32 %v567_v18, %v561_v17  ;;  %v631_v20 = vpop.permute.xlu0 %630 }
 0x39d   : > { %v633_v22 = vmul.f32 %v631_v20, %v622_v21 }
 0x39e   : > { %571 = vrot.lane.b32.xlu1 %v569_v19, %s2060_s13 }
 0x39f   : > { %635 = vrot.lane.b32.xlu2 %v633_v22, %s2060_s13 }
 0x3f9   : > { %v636_v25 = vpop.permute.xlu2 %635 }
 0x3fa   : > { %v2321_v26 = vadd.f32 %v636_v25, %v628_v24 }
 0x3fc   : > { %1816 = vtanh.f32 %v2321_v26 }
 0x402   : > { %v1817_v27 = vpop.eup %1816 }
 0x403   : > { %641 = vrot.lane.b32.xlu1 %v1817_v27, %s2060_s13 }
 0x410   : > { %v572_v29 = vpop.permute.xlu1 %571 }
 0x411   : > { %v2325_v31 = vadd.f32 %v572_v29, %v564_v28 }
 0x413   : > { %1818 = vtanh.f32 %v2325_v31 }
 0x419   : > { %v1819_v32 = vpop.eup %1818 }
 0x41a   : > { %577 = vrot.lane.b32.xlu0 %v1819_v32, %s2060_s13 }
 0x475   : > { %v642_v33 = vpop.permute.xlu1 %641 }
 0x476   : > { %v644_v30 = vmul.f32 %v642_v33, %v622_v21  ;;  %v757_v33 = vrot.slane %v2321_v26, 6 }
 0x478   : > { %v711_v34 = vpack.c.bf16 %v644_v30, %v644_v30  ;;  %646 = vrot.lane.b32.xlu2 %v644_v30, %s2061_s23 }
 0x47a   : > { %v713_v39 = vrot.slane %v711_v34, 1 }
 0x47c   : > { %714 = vrot.lane.b32.xlu1 %v713_v39, %s2061_s23 }
 0x48c   : > { %v578_v40 = vpop.permute.xlu0 %577 }
 0x48d   : > { %v580_v41 = vmul.f32 %v578_v40, %v561_v17 }
 0x48f   : > { %v650_v42 = vrot.slane %v580_v41, 6 }
 0x491   : > { %651 = vrot.lane.b32.xlu0 %v650_v42, %s2062_s24 }
 0x4d2   : > { %v647_v44 = vpop.permute.xlu2 %646 }
 0x4ee   : > { %v715_v43 = vpop.permute.xlu1 %714 }
 0x4ef   : > { %1699 = vmatmul.msk.bf16.vlgmr.msrb.gmra.mxu1 %vm442_vm6, %v715_v43 }
 0x4f0   : > { %1242 = vmatpush.bf16.msrb.mxu1 %v2243_v2 }
 0x4f4   : > { %1243 = vmatpush.bf16.msrb.mxu1 %v2249_v4 }
 0x503   : > { %v652_v45 = vpop.permute.xlu0 %651 }
 0x504   : > { %v654_v46 = vsel %vm442_vm6, %v647_v44, %v652_v45 }
 0x505   : > { %v655_v47 = vpack.c.bf16 %v654_v46, %v654_v46 }
 0x507   : > { %v657_v49 = vrot.slane %v655_v47, 1 }
 0x509   : > { %1697 = vmatmul.msk.bf16.vlgmr.msrb.gmra.mxu0 %vm527_vm7, %v657_v49 }
 0x50a   : > { %1182 = vmatpush.bf16.msrb.mxu0 %v2273_v35 }
 0x50e   : > { %1183 = vmatpush.bf16.msrb.mxu0 %v2277_v36 }
 0x512   : > { %1184 = vmatpush.bf16.msrb.mxu0 %v2283_v37 }
 0x516   : > { %1185 = vmatpush.bf16.msrb.mxu0 %v2291_v38 }
 0x56c   : > { %v728_v50 = vpop.f32.mrf.mxu1 }
 0x56d   : > { %v733_v51 = vrot.slane %v728_v50, 4 }
 0x56f   : > { %v735_v52 = vadd.f32 %v733_v51, %v2261_v8 }
 0x571   : > { %1820 = vtanh.f32 %v735_v52  ;;  %v1700_v60 = vmul.f32 -1.442695, %v735_v52 }
 0x574   : > { %v730_v53 = vpop.f32.mrf.mxu1 }
 0x577   : > { %v1821_v54 = vpop.eup %1820 }
 0x578   : > { %761 = vrot.lane.b32.xlu0 %v1821_v54, %s2060_s13 }
 0x586   : > { %v670_v56 = vpop.f32.mrf.mxu0 }
 0x587   : > { %v671_v57 = vadd.f32 %v2314_v48, %v670_v56 }
 0x589   : > { %1822 = vtanh.f32 %v671_v57  ;;  %v1698_v61 = vmul.f32 -1.442695, %v671_v57 }
 0x58a   : > { %1824 = vpow2.f32 %v1700_v60 }
 0x58b   : > { %1826 = vpow2.f32 %v1698_v61 }
 0x58e   : > { %v672_v58 = vpop.f32.mrf.mxu0 }
 0x58f   : > { %v1823_v59 = vpop.eup %1822 }
 0x590   : > { %696 = vrot.lane.b32.xlu2 %v1823_v59, %s2060_s13  ;;  %v1825_v62 = vpop.eup %1824 }
 0x591   : > { %v1827_v63 = vpop.eup %1826  ;;  %v739_v0 = vadd.f32 1.0, %v1825_v62 }
 0x592   : > { %v677_v1 = vadd.f32 1.0, %v1827_v63 }
 0x593   : > { %1828 = vrcp.f32 %v739_v0  ;;  %vm745_vm2 = vweird.f32 %v739_v0  ;;  %v751_v17 = vand.u32 2147483648, %v739_v0  ;;  %v749_v19 = vand.u32 2147483647, %v739_v0 }
 0x594   : > { %1830 = vrcp.f32 %v677_v1  ;;  %v689_v16 = vand.u32 2147483648, %v677_v1  ;;  %vm683_vm3 = vweird.f32 %v677_v1  ;;  %v687_v18 = vand.u32 2147483647, %v677_v1 }
 0x595   : > { %v752_v23 = vor.u32 1.1754944e-38, %v751_v17  ;;  %vm750_vm9 = vcmp.eq.f32.partialorder %v749_v19, 8.507059e+37 }
 0x596   : > { %v690_v22 = vor.u32 1.1754944e-38, %v689_v16  ;;  %vm688_vm8 = vcmp.eq.f32.partialorder %v687_v18, 8.507059e+37 }
 0x599   : > { %v1829_v3 = vpop.eup %1828 }
 0x59a   : > { %v1831_v5 = vpop.eup %1830  ;;  %v741_v9 = vmul.f32 %v1829_v3, %v739_v0  ;;  %vm746_vm0 = vweird.f32 %v1829_v3 }
 0x59b   : > { %v679_v7 = vmul.f32 %v1831_v5, %v677_v1  ;;  %vm684_vm1 = vweird.f32 %v1831_v5  ;;  %vm747_vm4 = vmor %vm745_vm2, %vm746_vm0 }
 0x59c   : > { %v742_v11 = vsub.f32 1.0, %v741_v9  ;;  %vm685_vm5 = vmor %vm683_vm3, %vm684_vm1 }
 0x59d   : > { %v680_v10 = vsub.f32 1.0, %v679_v7 }
 0x59e   : > { %v743_v13 = vmul.f32 %v1829_v3, %v742_v11 }
 0x59f   : > { %v681_v12 = vmul.f32 %v1831_v5, %v680_v10 }
 0x5a0   : > { %v744_v15 = vadd.f32 %v1829_v3, %v743_v13 }
 0x5a1   : > { %v682_v14 = vadd.f32 %v1831_v5, %v681_v12 }
 0x5a2   : > { %v748_v21 = vsel %vm747_vm4, %v1829_v3, %v744_v15 }
 0x5a3   : > { %v686_v20 = vsel %vm685_vm5, %v1831_v5, %v682_v14  ;;  %v753_v28 = vsel %vm750_vm9, %v752_v23, %v748_v21 }
 0x5a4   : > { %v691_v25 = vsel %vm688_vm8, %v690_v22, %v686_v20  ;;  %v759_v30 = vmul.f32 %v757_v33, %v753_v28 }
 0x5a5   : > { %v694_v41 = vmul.f32 %v691_v25, %v2325_v31 }
 0x5ea   : > { %v697_v24 = vpop.permute.xlu2 %696  ;;  %v762_v27 = vpop.permute.xlu0 %761 }
 0x5eb   : > { %v699_v29 = vmul.f32 %v697_v24, %v691_v25  ;;  %v764_v32 = vmul.f32 %v762_v27, %v753_v28 }
 0x5ed   : > { %701 = vrot.lane.b32.xlu1 %v699_v29, %s2060_s13  ;;  %766 = vrot.lane.b32.xlu2 %v764_v32, %s2060_s13 }
 0x647   : > { %v767_v34 = vpop.permute.xlu2 %766 }
 0x648   : > { %v2350_v39 = vadd.f32 %v767_v34, %v759_v30 }
 0x64a   : > { %1832 = vtanh.f32 %v2350_v39 }
 0x650   : > { %v1833_v40 = vpop.eup %1832 }
 0x651   : > { %772 = vrot.lane.b32.xlu1 %v1833_v40, %s2060_s13 }
 0x65f   : > { %v702_v42 = vpop.permute.xlu1 %701 }
 0x660   : > { %v2355_v43 = vadd.f32 %v702_v42, %v694_v41  ;;  %v888_v41 = vrot.slane %v2350_v39, 6 }
 0x662   : > { %1834 = vtanh.f32 %v2355_v43 }
 0x668   : > { %v1835_v44 = vpop.eup %1834 }
 0x669   : > { %707 = vrot.lane.b32.xlu0 %v1835_v44, %s2060_s13 }
 0x6c3   : > { %v773_v26 = vpop.permute.xlu1 %772 }
 0x6c4   : > { %v775_v45 = vmul.f32 %v773_v26, %v753_v28 }
 0x6c6   : > { %v842_v46 = vpack.c.bf16 %v775_v45, %v775_v45  ;;  %777 = vrot.lane.b32.xlu2 %v775_v45, %s2061_s23 }
 0x6c8   : > { %v844_v47 = vrot.slane %v842_v46, 2 }
 0x6ca   : > { %845 = vrot.lane.b32.xlu1 %v844_v47, %s2061_s23 }
 0x6db   : > { %v708_v49 = vpop.permute.xlu0 %707 }
 0x6dc   : > { %v710_v50 = vmul.f32 %v708_v49, %v691_v25 }
 0x6de   : > { %v781_v51 = vrot.slane %v710_v50, 4 }
 0x6e0   : > { %782 = vrot.lane.b32.xlu0 %v781_v51, %s2062_s24 }
 0x720   : > { %v778_v52 = vpop.permute.xlu2 %777 }
 0x73c   : > { %v846_v31 = vpop.permute.xlu1 %845 }
 0x73d   : > { %1703 = vmatmul.msk.bf16.vlgmr.msrb.gmra.mxu2 %vm442_vm6, %v846_v31 }
 0x73e   : > { %1373 = vmatpush.bf16.msrb.mxu2 %v2243_v2 }
 0x742   : > { %1374 = vmatpush.bf16.msrb.mxu2 %v2249_v4 }
 0x752   : > { %v783_v53 = vpop.permute.xlu0 %782 }
 0x753   : > { %v785_v54 = vsel %vm442_vm6, %v778_v52, %v783_v53 }
 0x754   : > { %v786_v56 = vpack.c.bf16 %v785_v54, %v785_v54 }
 0x756   : > { %v788_v57 = vrot.slane %v786_v56, 2 }
 0x758   : > { %1701 = vmatmul.msk.bf16.vlgmr.msrb.gmra.mxu3 %vm527_vm7, %v788_v57 }
 0x759   : > { %1313 = vmatpush.bf16.msrb.mxu3 %v2273_v35 }
 0x75d   : > { %1314 = vmatpush.bf16.msrb.mxu3 %v2277_v36 }
 0x761   : > { %1315 = vmatpush.bf16.msrb.mxu3 %v2283_v37 }
 0x765   : > { %1316 = vmatpush.bf16.msrb.mxu3 %v2291_v38 }
 0x7c0   : > { %v859_v58 = vpop.f32.mrf.mxu2 }
 0x7c1   : > { %v864_v2 = vrot.slane %v859_v58, 2 }
 0x7c3   : > { %v866_v4 = vadd.f32 %v864_v2, %v2261_v8 }
 0x7c5   : > { %1836 = vtanh.f32 %v866_v4  ;;  %v1704_v1 = vmul.f32 -1.442695, %v866_v4 }
 0x7c8   : > { %v861_v59 = vpop.f32.mrf.mxu2 }
 0x7cb   : > { %v1837_v60 = vpop.eup %1836 }
 0x7cc   : > { %892 = vrot.lane.b32.xlu0 %v1837_v60, %s2060_s13  ;;  %v2399_v60 = vadd.f32 %v2258_v6, %v2343_v55 }
 0x7db   : > { %v801_v61 = vpop.f32.mrf.mxu3 }
 0x7dc   : > { %v802_v62 = vadd.f32 %v2314_v48, %v801_v61 }
 0x7de   : > { %1838 = vtanh.f32 %v802_v62  ;;  %v1702_v3 = vmul.f32 -1.442695, %v802_v62 }
 0x7df   : > { %1840 = vpow2.f32 %v1704_v1 }
 0x7e0   : > { %1842 = vpow2.f32 %v1702_v3 }
 0x7e3   : > { %v803_v63 = vpop.f32.mrf.mxu3 }
 0x7e4   : > { %v1839_v0 = vpop.eup %1838 }
 0x7e5   : > { %827 = vrot.lane.b32.xlu2 %v1839_v0, %s2060_s13  ;;  %v1841_v5 = vpop.eup %1840 }
 0x7e6   : > { %v1843_v7 = vpop.eup %1842  ;;  %v870_v8 = vadd.f32 1.0, %v1841_v5 }
 0x7e7   : > { %v808_v9 = vadd.f32 1.0, %v1843_v7 }
 0x7e8   : > { %1844 = vrcp.f32 %v870_v8  ;;  %v882_v19 = vand.u32 2147483648, %v870_v8  ;;  %vm876_vm12 = vweird.f32 %v870_v8  ;;  %v880_v21 = vand.u32 2147483647, %v870_v8 }
 0x7e9   : > { %1846 = vrcp.f32 %v808_v9  ;;  %v820_v22 = vand.u32 2147483648, %v808_v9  ;;  %vm814_vm14 = vweird.f32 %v808_v9  ;;  %v818_v23 = vand.u32 2147483647, %v808_v9 }
 0x7ea   : > { %v883_v25 = vor.u32 1.1754944e-38, %v882_v19  ;;  %vm881_vm0 = vcmp.eq.f32.partialorder %v880_v21, 8.507059e+37 }
 0x7eb   : > { %v821_v28 = vor.u32 1.1754944e-38, %v820_v22  ;;  %vm819_vm1 = vcmp.eq.f32.partialorder %v818_v23, 8.507059e+37 }
 0x7ee   : > { %v1845_v10 = vpop.eup %1844 }
 0x7ef   : > { %v1847_v11 = vpop.eup %1846  ;;  %v872_v12 = vmul.f32 %v1845_v10, %v870_v8  ;;  %vm877_vm10 = vweird.f32 %v1845_v10 }
 0x7f0   : > { %v810_v13 = vmul.f32 %v1847_v11, %v808_v9  ;;  %vm815_vm11 = vweird.f32 %v1847_v11  ;;  %vm878_vm13 = vmor %vm876_vm12, %vm877_vm10 }
 0x7f1   : > { %v873_v14 = vsub.f32 1.0, %v872_v12  ;;  %vm816_vm15 = vmor %vm814_vm14, %vm815_vm11 }
 0x7f2   : > { %v811_v15 = vsub.f32 1.0, %v810_v13 }
 0x7f3   : > { %v874_v16 = vmul.f32 %v1845_v10, %v873_v14 }
 0x7f4   : > { %v812_v17 = vmul.f32 %v1847_v11, %v811_v15 }
 0x7f5   : > { %v875_v18 = vadd.f32 %v1845_v10, %v874_v16 }
 0x7f6   : > { %v813_v20 = vadd.f32 %v1847_v11, %v812_v17 }
 0x7f7   : > { %v879_v24 = vsel %vm878_vm13, %v1845_v10, %v875_v18 }
 0x7f8   : > { %v817_v27 = vsel %vm816_vm15, %v1847_v11, %v813_v20  ;;  %v884_v32 = vsel %vm881_vm0, %v883_v25, %v879_v24 }
 0x7f9   : > { %v822_v34 = vsel %vm819_vm1, %v821_v28, %v817_v27  ;;  %v890_v42 = vmul.f32 %v888_v41, %v884_v32 }
 0x7fa   : > { %v825_v46 = vmul.f32 %v822_v34, %v2355_v43 }
 0x83e   : > { %v893_v29 = vpop.permute.xlu0 %892 }
 0x83f   : > { %v895_v33 = vmul.f32 %v893_v29, %v884_v32  ;;  %v828_v30 = vpop.permute.xlu2 %827 }
 0x840   : > { %v830_v40 = vmul.f32 %v828_v30, %v822_v34 }
 0x841   : > { %897 = vrot.lane.b32.xlu2 %v895_v33, %s2060_s13 }
 0x842   : > { %832 = vrot.lane.b32.xlu1 %v830_v40, %s2060_s13 }
 0x89b   : > { %v898_v44 = vpop.permute.xlu2 %897 }
 0x89c   : > { %v2378_v26 = vadd.f32 %v898_v44, %v890_v42 }
 0x89e   : > { %1848 = vtanh.f32 %v2378_v26 }
 0x8a4   : > { %v1849_v45 = vpop.eup %1848 }
 0x8a5   : > { %903 = vrot.lane.b32.xlu1 %v1849_v45, %s2060_s13 }
 0x8b4   : > { %v833_v47 = vpop.permute.xlu1 %832 }
 0x8b5   : > { %v2383_v49 = vadd.f32 %v833_v47, %v825_v46 }
 0x8b7   : > { %1850 = vtanh.f32 %v2383_v49 }
 0x8bd   : > { %v1851_v50 = vpop.eup %1850 }
 0x8be   : > { %838 = vrot.lane.b32.xlu0 %v1851_v50, %s2060_s13 }
 0x917   : > { %v904_v39 = vpop.permute.xlu1 %903 }
 0x918   : > { %v906_v51 = vmul.f32 %v904_v39, %v884_v32 }
 0x91a   : > { %v973_v31 = vpack.c.bf16 %v906_v51, %v906_v51  ;;  %908 = vrot.lane.b32.xlu2 %v906_v51, %s2061_s23 }
 0x91c   : > { %v975_v52 = vrot.slane %v973_v31, 3 }
 0x91e   : > { %976 = vrot.lane.b32.xlu1 %v975_v52, %s2061_s23 }
 0x930   : > { %v839_v53 = vpop.permute.xlu0 %838 }
 0x931   : > { %v841_v54 = vmul.f32 %v839_v53, %v822_v34  ;;  %v1016_v34 = vrot.slane %v2378_v26, 6 }
 0x933   : > { %v912_v56 = vrot.slane %v841_v54, 2 }
 0x935   : > { %913 = vrot.lane.b32.xlu0 %v912_v56, %s2062_s24 }
 0x974   : > { %v909_v57 = vpop.permute.xlu2 %908 }
 0x990   : > { %v977_v43 = vpop.permute.xlu1 %976 }
 0x991   : > { %1707 = vmatmul.msk.bf16.vlgmr.msra.gmra.mxu1 %vm442_vm6, %v977_v43 }
 0x9a7   : > { %v914_v58 = vpop.permute.xlu0 %913 }
 0x9a8   : > { %v916_v2 = vsel %vm442_vm6, %v909_v57, %v914_v58 }
 0x9a9   : > { %v917_v4 = vpack.c.bf16 %v916_v2, %v916_v2 }
 0x9ab   : > { %v919_v59 = vrot.slane %v917_v4, 3 }
 0x9ad   : > { %1705 = vmatmul.msk.bf16.vlgmr.msra.gmra.mxu0 %vm527_vm7, %v919_v59 }
 0x9ae   : > { %1444 = vmatpush.bf16.msra.mxu0 %v2273_v35 }
 0x9b2   : > { %1445 = vmatpush.bf16.msra.mxu0 %v2277_v36 }
 0x9b6   : > { %1446 = vmatpush.bf16.msra.mxu0 %v2283_v37 }
 0x9ba   : > { %1447 = vmatpush.bf16.msra.mxu0 %v2291_v38 }
 0xa0e   : > { %v990_v61 = vpop.f32.mrf.mxu1 }
 0xa0f   : > { %v994_v62 = vadd.f32 %v990_v61, %v2399_v60 }
 0xa11   : > { %1852 = vtanh.f32 %v994_v62  ;;  %v1708_v38 = vmul.f32 -1.442695, %v994_v62 }
 0xa16   : > { %v992_v63 = vpop.f32.mrf.mxu1 }
 0xa17   : > { %v1853_v0 = vpop.eup %1852 }
 0xa18   : > { %1020 = vrot.lane.b32.xlu0 %v1853_v0, %s2060_s13 }
 0xa2a   : > { %v932_v1 = vpop.f32.mrf.mxu0 }
 0xa2b   : > { %v933_v35 = vadd.f32 %v2314_v48, %v932_v1 }
 0xa2d   : > { %1854 = vtanh.f32 %v933_v35  ;;  %v1706_v6 = vmul.f32 -1.442695, %v933_v35 }
 0xa2e   : > { %1856 = vpow2.f32 %v1708_v38 }
 0xa2f   : > { %1858 = vpow2.f32 %v1706_v6 }
 0xa32   : > { %v934_v36 = vpop.f32.mrf.mxu0 }
 0xa33   : > { %v1855_v37 = vpop.eup %1854 }
 0xa34   : > { %958 = vrot.lane.b32.xlu2 %v1855_v37, %s2060_s13  ;;  %v1857_v55 = vpop.eup %1856 }
 0xa35   : > { %v998_v3 = vadd.f32 1.0, %v1857_v55  ;;  %v1859_v5 = vpop.eup %1858 }
 0xa36   : > { %v939_v7 = vadd.f32 1.0, %v1859_v5 }
 0xa37   : > { %1860 = vrcp.f32 %v998_v3  ;;  %v1010_v17 = vand.u32 2147483648, %v998_v3  ;;  %vm1004_vm3 = vweird.f32 %v998_v3  ;;  %v1008_v18 = vand.u32 2147483647, %v998_v3 }
 0xa38   : > { %1862 = vrcp.f32 %v939_v7  ;;  %v951_v22 = vand.u32 2147483648, %v939_v7  ;;  %vm945_vm9 = vweird.f32 %v939_v7  ;;  %v949_v23 = vand.u32 2147483647, %v939_v7 }
 0xa39   : > { %v1011_v21 = vor.u32 1.1754944e-38, %v1010_v17  ;;  %vm1009_vm8 = vcmp.eq.f32.partialorder %v1008_v18, 8.507059e+37 }
 0xa3a   : > { %v952_v29 = vor.u32 1.1754944e-38, %v951_v22  ;;  %vm950_vm11 = vcmp.eq.f32.partialorder %v949_v23, 8.507059e+37 }
 0xa3d   : > { %v1861_v8 = vpop.eup %1860 }
 0xa3e   : > { %v1000_v9 = vmul.f32 %v1861_v8, %v998_v3  ;;  %v1863_v10 = vpop.eup %1862  ;;  %vm1005_vm2 = vweird.f32 %v1861_v8 }
 0xa3f   : > { %v941_v12 = vmul.f32 %v1863_v10, %v939_v7  ;;  %vm1006_vm4 = vmor %vm1004_vm3, %vm1005_vm2  ;;  %vm946_vm5 = vweird.f32 %v1863_v10 }
 0xa40   : > { %v1001_v11 = vsub.f32 1.0, %v1000_v9  ;;  %vm947_vm10 = vmor %vm945_vm9, %vm946_vm5 }
 0xa41   : > { %v942_v14 = vsub.f32 1.0, %v941_v12 }
 0xa42   : > { %v1002_v13 = vmul.f32 %v1861_v8, %v1001_v11 }
 0xa43   : > { %v943_v16 = vmul.f32 %v1863_v10, %v942_v14 }
 0xa44   : > { %v1003_v15 = vadd.f32 %v1861_v8, %v1002_v13 }
 0xa45   : > { %v944_v20 = vadd.f32 %v1863_v10, %v943_v16 }
 0xa46   : > { %v1007_v19 = vsel %vm1006_vm4, %v1861_v8, %v1003_v15 }
 0xa47   : > { %v1012_v25 = vsel %vm1009_vm8, %v1011_v21, %v1007_v19  ;;  %v948_v28 = vsel %vm947_vm10, %v1863_v10, %v944_v20 }
 0xa48   : > { %v953_v33 = vsel %vm950_vm11, %v952_v29, %v948_v28  ;;  %v1018_v40 = vmul.f32 %v1016_v34, %v1012_v25 }
 0xa49   : > { %v956_v45 = vmul.f32 %v953_v33, %v2383_v49 }
 0xa8a   : > { %v1021_v24 = vpop.permute.xlu0 %1020 }
 0xa8b   : > { %v1023_v27 = vmul.f32 %v1021_v24, %v1012_v25 }
 0xa8d   : > { %1025 = vrot.lane.b32.xlu2 %v1023_v27, %s2060_s13 }
 0xa8e   : > { %v959_v32 = vpop.permute.xlu2 %958 }
 0xa8f   : > { %v961_v30 = vmul.f32 %v959_v32, %v953_v33 }
 0xa91   : > { %963 = vrot.lane.b32.xlu1 %v961_v30, %s2060_s13 }
 0xae7   : > { %v1026_v41 = vpop.permute.xlu2 %1025 }
 0xae8   : > { %v2408_v42 = vadd.f32 %v1026_v41, %v1018_v40 }
 0xaea   : > { %1864 = vtanh.f32 %v2408_v42  ;;  %v1143_v29 = vrot.slane %v2408_v42, 6 }
 0xaf0   : > { %v1865_v44 = vpop.eup %1864 }
 0xaf1   : > { %1031 = vrot.lane.b32.xlu1 %v1865_v44, %s2060_s13 }
 0xb03   : > { %v964_v46 = vpop.permute.xlu1 %963 }
 0xb04   : > { %v2413_v47 = vadd.f32 %v964_v46, %v956_v45 }
 0xb06   : > { %1866 = vtanh.f32 %v2413_v47 }
 0xb0c   : > { %v1867_v50 = vpop.eup %1866 }
 0xb0d   : > { %969 = vrot.lane.b32.xlu0 %v1867_v50, %s2060_s13 }
 0xb63   : > { %v1032_v26 = vpop.permute.xlu1 %1031 }
 0xb64   : > { %v1034_v39 = vmul.f32 %v1032_v26, %v1012_v25 }
 0xb66   : > { %v1098_v51 = vpack.c.bf16 %v1034_v39, %v1034_v39  ;;  %1036 = vrot.lane.b32.xlu2 %v1034_v39, %s2061_s23 }
 0xb68   : > { %1100 = vrot.lane.b32.xlu1 %v1098_v51, %s2061_s23 }
 0xb7f   : > { %v970_v31 = vpop.permute.xlu0 %969 }
 0xb80   : > { %v972_v52 = vmul.f32 %v970_v31, %v953_v33 }
 0xb82   : > { %1040 = vrot.lane.b32.xlu0 %v972_v52, %s2062_s24 }
 0xbc0   : > { %v1037_v53 = vpop.permute.xlu2 %1036 }
 0xbda   : > { %v1101_v49 = vpop.permute.xlu1 %1100 }
 0xbdb   : > { %1711 = vmatmul.msk.bf16.vlgmr.msra.gmra.mxu2 %vm442_vm6, %v1101_v49 }
 0xbf4   : > { %v1041_v54 = vpop.permute.xlu0 %1040 }
 0xbf5   : > { %v1043_v56 = vsel %vm442_vm6, %v1037_v53, %v1041_v54 }
 0xbf6   : > { %v1044_v43 = vpack.c.bf16 %v1043_v56, %v1043_v56 }
 0xbf8   : > { %1709 = vmatmul.msk.bf16.vlgmr.msra.gmra.mxu3 %vm527_vm7, %v1044_v43 }
 0xc5e   : > { %v1114_v57 = vpop.f32.mrf.mxu2 }
 0xc5f   : > { %v1119_v58 = vrot.slane %v1114_v57, 6 }
 0xc61   : > { %v1121_v2 = vadd.f32 %v1119_v58, %v2399_v60 }
 0xc63   : > { %1868 = vtanh.f32 %v1121_v2  ;;  %v1712_v1 = vmul.f32 -1.442695, %v1121_v2 }
 0xc66   : > { %v1116_v4 = vpop.f32.mrf.mxu2 }
 0xc69   : > { %v1869_v59 = vpop.eup %1868 }
 0xc6a   : > { %1147 = vrot.lane.b32.xlu0 %v1869_v59, %s2060_s13 }
 0xc7b   : > { %v1057_v61 = vpop.f32.mrf.mxu3 }
 0xc7c   : > { %v1058_v62 = vadd.f32 %v2314_v48, %v1057_v61 }
 0xc7e   : > { %1870 = vtanh.f32 %v1058_v62  ;;  %v1710_v35 = vmul.f32 -1.442695, %v1058_v62 }
 0xc7f   : > { %1872 = vpow2.f32 %v1712_v1 }
 0xc80   : > { %1874 = vpow2.f32 %v1710_v35 }
 0xc83   : > { %v1059_v63 = vpop.f32.mrf.mxu3 }
 0xc84   : > { %v1871_v0 = vpop.eup %1870 }
 0xc85   : > { %1083 = vrot.lane.b32.xlu2 %v1871_v0, %s2060_s13  ;;  %v1873_v36 = vpop.eup %1872 }
 0xc86   : > { %v1875_v37 = vpop.eup %1874  ;;  %v1125_v38 = vadd.f32 1.0, %v1873_v36 }
 0xc87   : > { %v1064_v6 = vadd.f32 1.0, %v1875_v37 }
 0xc88   : > { %1876 = vrcp.f32 %v1125_v38  ;;  %v1137_v13 = vand.u32 2147483648, %v1125_v38  ;;  %vm1131_vm13 = vweird.f32 %v1125_v38  ;;  %v1135_v14 = vand.u32 2147483647, %v1125_v38 }
 0xc89   : > { %1878 = vrcp.f32 %v1064_v6  ;;  %v1076_v17 = vand.u32 2147483648, %v1064_v6  ;;  %vm1070_vm0 = vweird.f32 %v1064_v6  ;;  %v1074_v19 = vand.u32 2147483647, %v1064_v6 }
 0xc8a   : > { %v1138_v18 = vor.u32 1.1754944e-38, %v1137_v13  ;;  %vm1136_vm1 = vcmp.eq.f32.partialorder %v1135_v14, 8.507059e+37 }
 0xc8b   : > { %v1077_v24 = vor.u32 1.1754944e-38, %v1076_v17  ;;  %vm1075_vm3 = vcmp.eq.f32.partialorder %v1074_v19, 8.507059e+37 }
 0xc8e   : > { %v1877_v55 = vpop.eup %1876 }
 0xc8f   : > { %v1879_v3 = vpop.eup %1878  ;;  %v1127_v5 = vmul.f32 %v1877_v55, %v1125_v38  ;;  %vm1132_vm12 = vweird.f32 %v1877_v55 }
 0xc90   : > { %v1066_v7 = vmul.f32 %v1879_v3, %v1064_v6  ;;  %vm1133_vm14 = vmor %vm1131_vm13, %vm1132_vm12  ;;  %vm1071_vm15 = vweird.f32 %v1879_v3 }
 0xc91   : > { %v1128_v8 = vsub.f32 1.0, %v1127_v5  ;;  %vm1072_vm2 = vmor %vm1070_vm0, %vm1071_vm15 }
 0xc92   : > { %v1067_v9 = vsub.f32 1.0, %v1066_v7 }
 0xc93   : > { %v1129_v10 = vmul.f32 %v1877_v55, %v1128_v8 }
 0xc94   : > { %v1068_v11 = vmul.f32 %v1879_v3, %v1067_v9 }
 0xc95   : > { %v1130_v12 = vadd.f32 %v1877_v55, %v1129_v10 }
 0xc96   : > { %v1069_v15 = vadd.f32 %v1879_v3, %v1068_v11 }
 0xc97   : > { %v1134_v16 = vsel %vm1133_vm14, %v1877_v55, %v1130_v12 }
 0xc98   : > { %v1139_v21 = vsel %vm1136_vm1, %v1138_v18, %v1134_v16  ;;  %v1073_v22 = vsel %vm1072_vm2, %v1879_v3, %v1069_v15 }
 0xc99   : > { %v1078_v27 = vsel %vm1075_vm3, %v1077_v24, %v1073_v22  ;;  %v1145_v32 = vmul.f32 %v1143_v29, %v1139_v21 }
 0xc9a   : > { %v1081_v40 = vmul.f32 %v1078_v27, %v2413_v47 }
 0xcdc   : > { %v1148_v20 = vpop.permute.xlu0 %1147 }
 0xcdd   : > { %v1150_v23 = vmul.f32 %v1148_v20, %v1139_v21 }
 0xcdf   : > { %v1084_v25 = vpop.permute.xlu2 %1083  ;;  %1152 = vrot.lane.b32.xlu2 %v1150_v23, %s2060_s13 }
 0xce0   : > { %v1086_v28 = vmul.f32 %v1084_v25, %v1078_v27 }
 0xce2   : > { %1088 = vrot.lane.b32.xlu1 %v1086_v28, %s2060_s13 }
 0xd39   : > { %v1153_v33 = vpop.permute.xlu2 %1152 }
 0xd3a   : > { %v2430_v30 = vadd.f32 %v1153_v33, %v1145_v32 }
 0xd3c   : > { %1880 = vtanh.f32 %v2430_v30 }
 0xd42   : > { %v1881_v34 = vpop.eup %1880 }
 0xd43   : > { %1158 = vrot.lane.b32.xlu1 %v1881_v34, %s2060_s13 }
 0xd54   : > { %v1089_v41 = vpop.permute.xlu1 %1088 }
 0xd55   : > { %v2435_v44 = vadd.f32 %v1089_v41, %v1081_v40 }
 0xd57   : > { %1882 = vtanh.f32 %v2435_v44 }
 0xd5d   : > { %v1883_v45 = vpop.eup %1882 }
 0xd5e   : > { %1094 = vrot.lane.b32.xlu0 %v1883_v45, %s2060_s13 }
 0xdb5   : > { %v1159_v42 = vpop.permute.xlu1 %1158 }
 0xdb6   : > { %v1161_v46 = vmul.f32 %v1159_v42, %v1139_v21 }
 0xdb8   : > { %v1228_v50 = vpack.c.bf16 %v1161_v46, %v1161_v46  ;;  %1163 = vrot.lane.b32.xlu2 %v1161_v46, %s2061_s23 }
 0xdba   : > { %v1230_v26 = vrot.slane %v1228_v50, 1 }
 0xdbc   : > { %1231 = vrot.lane.b32.xlu1 %v1230_v26, %s2061_s23 }
 0xdd0   : > { %v1095_v39 = vpop.permute.xlu0 %1094 }
 0xdd1   : > { %v1097_v51 = vmul.f32 %v1095_v39, %v1078_v27  ;;  %v1274_v27 = vrot.slane %v2430_v30, 6 }
 0xdd3   : > { %v1167_v31 = vrot.slane %v1097_v51, 6 }
 0xdd5   : > { %1168 = vrot.lane.b32.xlu0 %v1167_v31, %s2062_s24 }
 0xe12   : > { %v1164_v52 = vpop.permute.xlu2 %1163 }
 0xe2e   : > { %v1232_v47 = vpop.permute.xlu1 %1231 }
 0xe2f   : > { %1715 = vmatmul.msk.bf16.vlgmr.msrb.gmra.mxu1 %vm442_vm6, %v1232_v47 }
 0xe47   : > { %v1169_v49 = vpop.permute.xlu0 %1168 }
 0xe48   : > { %v1171_v53 = vsel %vm442_vm6, %v1164_v52, %v1169_v49 }
 0xe49   : > { %v1172_v54 = vpack.c.bf16 %v1171_v53, %v1171_v53 }
 0xe4b   : > { %v1174_v56 = vrot.slane %v1172_v54, 1 }
 0xe4d   : > { %1713 = vmatmul.msk.bf16.vlgmr.msrb.gmra.mxu0 %vm527_vm7, %v1174_v56 }
 0xeac   : > { %v1245_v43 = vpop.f32.mrf.mxu1 }
 0xead   : > { %v1250_v57 = vrot.slane %v1245_v43, 4 }
 0xeaf   : > { %v1252_v58 = vadd.f32 %v1250_v57, %v2399_v60 }
 0xeb1   : > { %1884 = vtanh.f32 %v1252_v58  ;;  %v1716_v0 = vmul.f32 -1.442695, %v1252_v58 }
 0xeb4   : > { %v1247_v2 = vpop.f32.mrf.mxu1 }
 0xeb7   : > { %v1885_v4 = vpop.eup %1884 }
 0xeb8   : > { %1278 = vrot.lane.b32.xlu0 %v1885_v4, %s2060_s13  ;;  %v2470_v4 = vld [vmem:[%s2238_s19] ss:$0 sm:$0xff]  ;;  %s1999_s19 = sshra.s32 %s1512_s15, 4  ;;  %s2000_s19 = int_to_ptr.hbm [resolvable:$true] %s1999_s19 }
 0xeb9   : > { %s2001_s26 = scalar_lea.hbm %s2000_s19, 2  ;;  %p2006_p2 = scmp.lt.s32.totalorder %s2000_s19, %s2529_s6 }
 0xeba   : > { %p2002_p6 = scmp.ne.s32.totalorder %s2000_s19, %s2001_s26  ;;  %p2007_p9 = scmp.lt.s32.totalorder %s2005_s8, %s2001_s26 }
 0xebc   : > { %p2003_p3 = pnand %p2002_p6, %p2148_p11  ;;  %p2008_p0 = por %p2007_p9, %p2006_p2 }
 0xebe   : > { %p2004_p10 = pneg %p2003_p3 }
 0xec0   : > { %p2009_p1 = pnand %p2008_p0, %p2004_p10 }
 0xeca   : > { %v1187_v59 = vpop.f32.mrf.mxu0 }
 0xecb   : > { %v1188_v61 = vadd.f32 %v2314_v48, %v1187_v59 }
 0xecd   : > { %1886 = vtanh.f32 %v1188_v61  ;;  %v1714_v1 = vmul.f32 -1.442695, %v1188_v61 }
 0xece   : > { %1888 = vpow2.f32 %v1716_v0 }
 0xecf   : > { %1890 = vpow2.f32 %v1714_v1 }
 0xed2   : > { %v1189_v62 = vpop.f32.mrf.mxu0 }
 0xed3   : > { %v1887_v63 = vpop.eup %1886 }
 0xed4   : > { %1213 = vrot.lane.b32.xlu2 %v1887_v63, %s2060_s13  ;;  %v1889_v35 = vpop.eup %1888 }
 0xed5   : > { %v1256_v36 = vadd.f32 1.0, %v1889_v35  ;;  %v1891_v37 = vpop.eup %1890 }
 0xed6   : > { %v1194_v38 = vadd.f32 1.0, %v1891_v37 }
 0xed7   : > { %1892 = vrcp.f32 %v1256_v36  ;;  %v1268_v11 = vand.u32 2147483648, %v1256_v36  ;;  %vm1262_vm5 = vweird.f32 %v1256_v36  ;;  %v1266_v12 = vand.u32 2147483647, %v1256_v36 }
 0xed8   : > { %1894 = vrcp.f32 %v1194_v38  ;;  %v1206_v16 = vand.u32 2147483648, %v1194_v38  ;;  %vm1200_vm11 = vweird.f32 %v1194_v38  ;;  %v1204_v17 = vand.u32 2147483647, %v1194_v38 }
 0xed9   : > { %v1269_v15 = vor.u32 1.1754944e-38, %v1268_v11  ;;  %vm1267_vm10 = vcmp.eq.f32.partialorder %v1266_v12, 8.507059e+37 }
 0xeda   : > { %v1207_v22 = vor.u32 1.1754944e-38, %v1206_v16  ;;  %vm1205_vm13 = vcmp.eq.f32.partialorder %v1204_v17, 8.507059e+37 }
 0xedd   : > { %v1893_v6 = vpop.eup %1892 }
 0xede   : > { %v1258_v55 = vmul.f32 %v1893_v6, %v1256_v36  ;;  %v1895_v3 = vpop.eup %1894  ;;  %vm1263_vm4 = vweird.f32 %v1893_v6 }
 0xedf   : > { %v1196_v48 = vmul.f32 %v1895_v3, %v1194_v38  ;;  %vm1264_vm8 = vmor %vm1262_vm5, %vm1263_vm4  ;;  %vm1201_vm9 = vweird.f32 %v1895_v3 }
 0xee0   : > { %v1259_v5 = vsub.f32 1.0, %v1258_v55  ;;  %vm1202_vm12 = vmor %vm1200_vm11, %vm1201_vm9 }
 0xee1   : > { %v1197_v8 = vsub.f32 1.0, %v1196_v48 }
 0xee2   : > { %v1260_v7 = vmul.f32 %v1893_v6, %v1259_v5 }
 0xee3   : > { %v1198_v10 = vmul.f32 %v1895_v3, %v1197_v8 }
 0xee4   : > { %v1261_v9 = vadd.f32 %v1893_v6, %v1260_v7 }
 0xee5   : > { %v1199_v14 = vadd.f32 %v1895_v3, %v1198_v10 }
 0xee6   : > { %v1265_v13 = vsel %vm1264_vm8, %v1893_v6, %v1261_v9 }
 0xee7   : > { %v1270_v19 = vsel %vm1267_vm10, %v1269_v15, %v1265_v13  ;;  %v1203_v21 = vsel %vm1202_vm12, %v1895_v3, %v1199_v14  ;;  %vm1494_vm10 = vcmask 254976  }
 0xee8   : > { %v1208_v24 = vsel %vm1205_vm13, %v1207_v22, %v1203_v21  ;;  %v1276_v28 = vmul.f32 %v1274_v27, %v1270_v19 }
 0xee9   : > { %v1211_v34 = vmul.f32 %v1208_v24, %v2435_v44 }
 0xf2a   : > { %v1279_v18 = vpop.permute.xlu0 %1278 }
 0xf2b   : > { %v1281_v20 = vmul.f32 %v1279_v18, %v1270_v19 }
 0xf2d   : > { %1283 = vrot.lane.b32.xlu2 %v1281_v20, %s2060_s13 }
 0xf2e   : > { %v1214_v23 = vpop.permute.xlu2 %1213 }
 0xf2f   : > { %v1216_v25 = vmul.f32 %v1214_v23, %v1208_v24 }
 0xf31   : > { %1218 = vrot.lane.b32.xlu1 %v1216_v25, %s2060_s13 }
 0xf87   : > { %v1284_v29 = vpop.permute.xlu2 %1283 }
 0xf88   : > { %v2452_v32 = vadd.f32 %v1284_v29, %v1276_v28 }
 0xf8a   : > { %1896 = vtanh.f32 %v2452_v32 }
 0xf90   : > { %v1897_v33 = vpop.eup %1896 }
 0xf91   : > { %1289 = vrot.lane.b32.xlu1 %v1897_v33, %s2060_s13 }
 0xfa3   : > { %v1219_v40 = vpop.permute.xlu1 %1218 }
 0xfa4   : > { %v2457_v41 = vadd.f32 %v1219_v40, %v1211_v34 }
 0xfa6   : > { %1898 = vtanh.f32 %v2457_v41 }
 0xfac   : > { %v1899_v45 = vpop.eup %1898 }
 0xfad   : > { %1224 = vrot.lane.b32.xlu0 %v1899_v45, %s2060_s13 }
0x1003   : > { %v1290_v30 = vpop.permute.xlu1 %1289 }
0x1004   : > { %v1292_v42 = vmul.f32 %v1290_v30, %v1270_v19 }
0x1006   : > { %v1359_v46 = vpack.c.bf16 %v1292_v42, %v1292_v42  ;;  %1294 = vrot.lane.b32.xlu2 %v1292_v42, %s2061_s23 }
0x1008   : > { %v1361_v50 = vrot.slane %v1359_v46, 2 }
0x100a   : > { %1362 = vrot.lane.b32.xlu1 %v1361_v50, %s2061_s23 }
0x101f   : > { %v1225_v26 = vpop.permute.xlu0 %1224 }
0x1020   : > { %v1227_v39 = vmul.f32 %v1225_v26, %v1208_v24  ;;  %v1405_v24 = vrot.slane %v2452_v32, 6 }
0x1022   : > { %v1298_v51 = vrot.slane %v1227_v39, 4 }
0x1024   : > { %1299 = vrot.lane.b32.xlu0 %v1298_v51, %s2062_s24 }
0x1060   : > { %v1295_v31 = vpop.permute.xlu2 %1294 }
0x107c   : > { %v1363_v44 = vpop.permute.xlu1 %1362 }
0x107d   : > { %1719 = vmatmul.msk.bf16.vlgmr.msrb.gmra.mxu2 %vm442_vm6, %v1363_v44 }
0x1096   : > { %v1300_v47 = vpop.permute.xlu0 %1299 }
0x1097   : > { %v1302_v52 = vsel %vm442_vm6, %v1295_v31, %v1300_v47 }
0x1098   : > { %v1303_v49 = vpack.c.bf16 %v1302_v52, %v1302_v52 }
0x109a   : > { %v1305_v53 = vrot.slane %v1303_v49, 2 }
0x109c   : > { %1717 = vmatmul.msk.bf16.vlgmr.msrb.gmra.mxu3 %vm527_vm7, %v1305_v53 }
0x1100   : > { %v1376_v54 = vpop.f32.mrf.mxu2 }
0x1101   : > { %v1381_v56 = vrot.slane %v1376_v54, 2 }
0x1103   : > { %v1383_v43 = vadd.f32 %v1381_v56, %v2399_v60 }
0x1105   : > { %1900 = vtanh.f32 %v1383_v43  ;;  %v1720_v63 = vmul.f32 -1.442695, %v1383_v43 }
0x1108   : > { %v1378_v57 = vpop.f32.mrf.mxu2 }
0x110b   : > { %v1901_v58 = vpop.eup %1900 }
0x110c   : > { %1409 = vrot.lane.b32.xlu0 %v1901_v58, %s2060_s13 }
0x111f   : > { %v1318_v2 = vpop.f32.mrf.mxu3 }
0x1120   : > { %v1319_v59 = vadd.f32 %v2470_v4, %v1318_v2 }
0x1122   : > { %1902 = vtanh.f32 %v1319_v59  ;;  %v1718_v0 = vmul.f32 -1.442695, %v1319_v59 }
0x1123   : > { %1904 = vpow2.f32 %v1720_v63 }
0x1124   : > { %1906 = vpow2.f32 %v1718_v0 }
0x1127   : > { %v1320_v61 = vpop.f32.mrf.mxu3 }
0x1128   : > { %v1903_v62 = vpop.eup %1902 }
0x1129   : > { %1344 = vrot.lane.b32.xlu2 %v1903_v62, %s2060_s13  ;;  %v1905_v60 = vpop.eup %1904 }
0x112a   : > { %v1387_v1 = vadd.f32 1.0, %v1905_v60  ;;  %v1907_v35 = vpop.eup %1906 }
0x112b   : > { %v1325_v36 = vadd.f32 1.0, %v1907_v35 }
0x112c   : > { %1908 = vrcp.f32 %v1387_v1  ;;  %v1399_v8 = vand.u32 2147483648, %v1387_v1  ;;  %vm1393_vm15 = vweird.f32 %v1387_v1  ;;  %v1397_v10 = vand.u32 2147483647, %v1387_v1 }
0x112d   : > { %1910 = vrcp.f32 %v1325_v36  ;;  %v1337_v14 = vand.u32 2147483648, %v1325_v36  ;;  %vm1331_vm3 = vweird.f32 %v1325_v36  ;;  %v1335_v17 = vand.u32 2147483647, %v1325_v36 }
0x112e   : > { %v1400_v12 = vor.u32 1.1754944e-38, %v1399_v8  ;;  %vm1398_vm2 = vcmp.eq.f32.partialorder %v1397_v10, 8.507059e+37 }
0x112f   : > { %v1338_v20 = vor.u32 1.1754944e-38, %v1337_v14  ;;  %vm1336_vm5 = vcmp.eq.f32.partialorder %v1335_v17, 8.507059e+37 }
0x1132   : > { %v1909_v37 = vpop.eup %1908 }
0x1133   : > { %v1389_v38 = vmul.f32 %v1909_v37, %v1387_v1  ;;  %v1911_v6 = vpop.eup %1910  ;;  %vm1394_vm14 = vweird.f32 %v1909_v37 }
0x1134   : > { %v1327_v3 = vmul.f32 %v1911_v6, %v1325_v36  ;;  %vm1395_vm0 = vmor %vm1393_vm15, %vm1394_vm14  ;;  %vm1332_vm1 = vweird.f32 %v1911_v6 }
0x1135   : > { %v1390_v55 = vsub.f32 1.0, %v1389_v38  ;;  %vm1333_vm4 = vmor %vm1331_vm3, %vm1332_vm1 }
0x1136   : > { %v1328_v48 = vsub.f32 1.0, %v1327_v3 }
0x1137   : > { %v1391_v5 = vmul.f32 %v1909_v37, %v1390_v55 }
0x1138   : > { %v1329_v9 = vmul.f32 %v1911_v6, %v1328_v48 }
0x1139   : > { %v1392_v7 = vadd.f32 %v1909_v37, %v1391_v5 }
0x113a   : > { %v1330_v13 = vadd.f32 %v1911_v6, %v1329_v9 }
0x113b   : > { %v1396_v11 = vsel %vm1395_vm0, %v1909_v37, %v1392_v7 }
0x113c   : > { %v1401_v16 = vsel %vm1398_vm2, %v1400_v12, %v1396_v11  ;;  %v1334_v19 = vsel %vm1333_vm4, %v1911_v6, %v1330_v13 }
0x113d   : > { %v1339_v22 = vsel %vm1336_vm5, %v1338_v20, %v1334_v19  ;;  %v1407_v25 = vmul.f32 %v1405_v24, %v1401_v16 }
0x113e   : > { %v1342_v33 = vmul.f32 %v1339_v22, %v2457_v41 }
0x117e   : > { %v1410_v15 = vpop.permute.xlu0 %1409 }
0x117f   : > { %v1412_v18 = vmul.f32 %v1410_v15, %v1401_v16 }
0x1181   : > { %1414 = vrot.lane.b32.xlu2 %v1412_v18, %s2060_s13 }
0x1183   : > { %v1345_v21 = vpop.permute.xlu2 %1344 }
0x1184   : > { %v1347_v23 = vmul.f32 %v1345_v21, %v1339_v22 }
0x1186   : > { %1349 = vrot.lane.b32.xlu1 %v1347_v23, %s2060_s13 }
0x11db   : > { %v1415_v27 = vpop.permute.xlu2 %1414 }
0x11dc   : > { %v1417_v28 = vadd.f32 %v1415_v27, %v1407_v25 }
0x11de   : > { %1912 = vtanh.f32 %v1417_v28 }
0x11e4   : > { %v1913_v29 = vpop.eup %1912 }
0x11e5   : > { %1420 = vrot.lane.b32.xlu1 %v1913_v29, %s2060_s13 }
0x11f8   : > { %v1350_v34 = vpop.permute.xlu1 %1349 }
0x11f9   : > { %v1352_v40 = vadd.f32 %v1350_v34, %v1342_v33 }
0x11fb   : > { %1914 = vtanh.f32 %v1352_v40 }
0x1201   : > { %v1915_v45 = vpop.eup %1914 }
0x1202   : > { %1355 = vrot.lane.b32.xlu0 %v1915_v45, %s2060_s13 }
0x1257   : > { %v1421_v30 = vpop.permute.xlu1 %1420 }
0x1258   : > { %v1423_v42 = vmul.f32 %v1421_v30, %v1401_v16 }
0x125a   : > { %1425 = vrot.lane.b32.xlu2 %v1423_v42, %s2061_s23 }
0x1274   : > { %v1356_v32 = vpop.permute.xlu0 %1355 }
0x1275   : > { %v1358_v46 = vmul.f32 %v1356_v32, %v1339_v22 }
0x1277   : > { %v1429_v50 = vrot.slane %v1358_v46, 2 }
0x1279   : > { %1430 = vrot.lane.b32.xlu0 %v1429_v50, %s2062_s24 }
0x12b4   : > { %v1426_v26 = vpop.permute.xlu2 %1425 }
0x12eb   : > { %v1431_v39 = vpop.permute.xlu0 %1430 }
0x12ec   : > { %v1433_v51 = vsel %vm442_vm6, %v1426_v26, %v1431_v39 }
0x12ed   : > { %v1434_v41 = vpack.c.bf16 %v1433_v51, %v1433_v51 }
0x12ef   : > { %v1436_v44 = vrot.slane %v1434_v41, 3 }
0x12f1   : > { %1721 = vmatmul.msk.bf16.vlgmr.msra.gmra.mxu0 %vm527_vm7, %v1436_v44 }
0x136e   : > { %v1449_v31 = vpop.f32.mrf.mxu0 }
0x136f   : > { %v1450_v47 = vadd.f32 %v2470_v4, %v1449_v31 }
0x1371   : > { %1916 = vtanh.f32 %v1450_v47  ;;  %v1722_v53 = vmul.f32 -1.442695, %v1450_v47 }
0x1373   : > { %1918 = vpow2.f32 %v1722_v53 }
0x1376   : > { %v1451_v52 = vpop.f32.mrf.mxu0 }
0x1377   : > { %v1917_v49 = vpop.eup %1916 }
0x1378   : > { %1475 = vrot.lane.b32.xlu1 %v1917_v49, %s2060_s13 }
0x1379   : > { %v1919_v54 = vpop.eup %1918 }
0x137a   : > { %v1456_v56 = vadd.f32 1.0, %v1919_v54 }
0x137c   : > { %1920 = vrcp.f32 %v1456_v56  ;;  %v1468_v61 = vand.u32 2147483648, %v1456_v56  ;;  %vm1462_vm7 = vweird.f32 %v1456_v56  ;;  %v1466_v62 = vand.u32 2147483647, %v1456_v56 }
0x137e   : > { %v1469_v63 = vor.u32 1.1754944e-38, %v1468_v61  ;;  %vm1467_vm9 = vcmp.eq.f32.partialorder %v1466_v62, 8.507059e+37 }
0x1382   : > { %v1921_v43 = vpop.eup %1920 }
0x1383   : > { %v1458_v57 = vmul.f32 %v1921_v43, %v1456_v56  ;;  %vm1463_vm6 = vweird.f32 %v1921_v43 }
0x1384   : > { %vm1464_vm8 = vmor %vm1462_vm7, %vm1463_vm6 }
0x1385   : > { %v1459_v58 = vsub.f32 1.0, %v1458_v57 }
0x1387   : > { %v1460_v2 = vmul.f32 %v1921_v43, %v1459_v58 }
0x1389   : > { %v1461_v59 = vadd.f32 %v1921_v43, %v1460_v2 }
0x138b   : > { %v1465_v4 = vsel %vm1464_vm8, %v1921_v43, %v1461_v59 }
0x138c   : > { %v1470_v60 = vsel %vm1467_vm9, %v1469_v63, %v1465_v4 }
0x138d   : > { %v1473_v35 = vmul.f32 %v1470_v60, %v1352_v40 }
0x13ea   : > { %v1476_v0 = vpop.permute.xlu1 %1475 }
0x13eb   : > { %v1478_v1 = vmul.f32 %v1476_v0, %v1470_v60 }
0x13ed   : > { %1480 = vrot.lane.b32.xlu2 %v1478_v1, %s2060_s13 }
0x1447   : > { %v1481_v36 = vpop.permute.xlu2 %1480 }
0x1448   : > { %v1483_v37 = vadd.f32 %v1481_v36, %v1473_v35 }
0x144a   : > { %1922 = vtanh.f32 %v1483_v37 }
0x1450   : > { %v1923_v38 = vpop.eup %1922 }
0x1451   : > { %1486 = vrot.lane.b32.xlu0 %v1923_v38, %s2060_s13 }
0x14c3   : > { %v1487_v6 = vpop.permute.xlu0 %1486 }
0x14c4   : > { %v1489_v55 = vmul.f32 %v1487_v6, %v1470_v60 }
0x14c6   : > { %1491 = vrot.lane.b32.xlu1 %v1489_v55, %s2061_s23 }
0x1538   : > { %v1492_v3 = vpop.permute.xlu1 %1491 }
0x1539   : > { %1495 = vst.msk [vmem:[%s363_s7] sm:$0x3] %vm1494_vm10, %v1492_v3 }
0x153a   : > { %2012 = shalt.err (!%p2009_p1)
}
0x153b   : > { %1741 = dma.vmem_to_hbm [thread:$0]  (%p2148_p11), %s1510_s14, 32, %s1512_s15, %s1497_s17  }
0x153c PF: > { %s2546_s2 = sld [smem:[#allocation12_spill]]  ;;  %s1523_s28 = sand.u32 1, %s2043_s21  }
0x153d   : > { %s1524_s13 = scalar_lea.sflag [#allocation4], %s1523_s28 }
0x1542   : > { %p2547_p4 = scmp.ge.s32.totalorder %s2546_s2, 2 }
0x1544   : > { %p1751_p7 = pnand %p2547_p4, %p2152_p12 }
0x1546   : > { %p1752_p5 = pneg %p1751_p7 }
0x1548   : > { %2038 = dma.done.wait (%p1752_p5), %s1524_s13, 32  }
0x1549   : > { %2040 = vsyncadd (%p1752_p5), %s1524_s13, 4294967264  ;;  %s2548_s24 = sld [smem:[#allocation13_spill]]  ;;  %s2551_s21 = smov %s2047_s22 }
0x154a   : > { %s2549_s23 = sld [smem:[#allocation11_spill]] }
0x154b   : > { %s2550_s27 = sld [smem:[#allocation14_spill]] }
0x154f   : > { %p22_p8 = scmp.ge.s32.totalorder %s2548_s24, 4  }
0x1550   : > { %s2552_s22 = smov %s2549_s23 }
0x1551   : > { %s2553_s23 = smov %s2550_s27  ;;  %24 = sbr.rel (!%p22_p8) target bundleno = 9 (0x9), region = 114 }
0x1556   :  { %1530 = vsyncpa [#allocation3], 1 }
0x1557   :  { %1532 = vsyncpa [#allocation3 + $0x1], 1 }
0x1558   :  { %1533 = vsyncpa [#allocation6], 1 }
0x1559   :  { %1535 = vsyncpa [#allocation6 + $0x1], 1 }
0x155a   :  { %1536 = vsyncpa [#allocation4], 1 }
0x155b   :  { %1538 = vsyncpa [#allocation4 + $0x1], 1 }

</bundles_post_ra>
